<compile_context>
chip_gen: v5e
topology: v5e:2x2
jax: 0.10.0
libtpu: 0.0.40
codegen_flags: <defaults>
</compile_context>

<pallas_src>
import functools
import math

import jax
import jax.numpy as jnp
from jax import lax
from jax.experimental import pallas as pl
from jax.experimental.pallas import tpu as pltpu

K_HOPS = 2  # propagation depth (reference default k=2)
_VMEM_LIMIT = 32 * 1024 * 1024  # <= v7x physical 64 MiB, > v5e default 16 MiB


def _round_up(x, m):
    return ((x + m - 1) // m) * m


def _fit(dim, target, align, min_blocks=1):
    """Tile size for `dim`: largest multiple of `align` that is <= target and
    evenly divides dim (full dim if dim <= target).  With min_blocks>1 the
    target is capped so the grid has at least that many blocks (megacore)."""
    if min_blocks > 1 and dim >= min_blocks * align:
        target = min(target, dim // min_blocks)
    if dim <= target:
        return dim
    t = (target // align) * align
    while t >= align:
        if dim % t == 0:
            return t
        t -= align
    return dim  # fallback (dims are padded wrapper-side so this is rare)


# ---------------------------------------------------------------------------
# Dense bf16 matmul (+ optional ReLU), RHS fully resident in VMEM.
# ---------------------------------------------------------------------------
def _mm_kernel(a_ref, b_ref, o_ref, acc_ref, *, apply_relu, tk, nk):
    k = pl.program_id(2)
    a = a_ref[...]
    if nk == 1:
        b = b_ref[...]
    else:
        b = b_ref[pl.ds(pl.multiple_of(k * tk, tk), tk), :]
    p = jnp.dot(a, b, preferred_element_type=jnp.float32)

    if nk == 1:                      # no accumulator round-trip needed
        r = jnp.maximum(p, 0.0) if apply_relu else p
        o_ref[...] = r.astype(o_ref.dtype)
    else:
        @pl.when(k == 0)
        def _():
            acc_ref[...] = jnp.zeros_like(acc_ref)

        acc_ref[...] += p

        @pl.when(k == nk - 1)
        def _():
            r = acc_ref[...]
            if apply_relu:
                r = jnp.maximum(r, 0.0)
            o_ref[...] = r.astype(o_ref.dtype)


def matmul_bf16(a, b, *, apply_relu, out_dtype=jnp.bfloat16,
                tm_t=512, tn_t=256, tk_t=1024):
    M, K = a.shape
    K2, Nc = b.shape
    assert K == K2
    tm = _fit(M, tm_t, 8, min_blocks=2)
    tn = _fit(Nc, tn_t, 128)
    tk = _fit(K, tk_t, 128)
    nk = K // tk
    grid = (M // tm, Nc // tn, nk)
    bytes_accessed = int(a.size * a.dtype.itemsize + b.size * b.dtype.itemsize
                         + M * Nc * jnp.dtype(out_dtype).itemsize)
    return pl.pallas_call(
        functools.partial(_mm_kernel, apply_relu=apply_relu, tk=tk, nk=nk),
        out_shape=jax.ShapeDtypeStruct((M, Nc), out_dtype),
        grid_spec=pltpu.PrefetchScalarGridSpec(
            num_scalar_prefetch=0,
            grid=grid,
            in_specs=[
                pl.BlockSpec((tm, tk), lambda i, j, k: (i, k)),
                pl.BlockSpec((K, tn), lambda i, j, k: (0, j)),   # resident RHS
            ],
            out_specs=pl.BlockSpec((tm, tn), lambda i, j, k: (i, j)),
            scratch_shapes=[pltpu.VMEM((tm, tn), jnp.float32)],
        ),
        compiler_params=pltpu.CompilerParams(
            dimension_semantics=("parallel", "parallel", "arbitrary"),
            vmem_limit_bytes=_VMEM_LIMIT),
        cost_estimate=pl.CostEstimate(
            flops=2 * M * K * Nc, transcendentals=0,
            bytes_accessed=bytes_accessed),
    )(a, b)


# ---------------------------------------------------------------------------
# Propagation matmul: relu(D^-1/2 A D^-1/2 @ r) with A stored as exact int8
# indicator + f32 scale vectors; dequant to bf16 inside the kernel.
# ---------------------------------------------------------------------------
def _prop_kernel(a_ref, drow_ref, dcol_ref, b_ref, o_ref, acc_ref, *, tk, nk):
    k = pl.program_id(2)
    # bf16(d_i * d_j) * indicator  — bit-identical to bf16(A_norm).
    a = ((drow_ref[...] * dcol_ref[...])
         * a_ref[...].astype(jnp.float32)).astype(jnp.bfloat16)
    if nk == 1:
        b = b_ref[...]
    else:
        b = b_ref[pl.ds(pl.multiple_of(k * tk, tk), tk), :]
    p = jnp.dot(a, b, preferred_element_type=jnp.float32)

    if nk == 1:
        o_ref[...] = jnp.maximum(p, 0.0).astype(o_ref.dtype)
    else:
        @pl.when(k == 0)
        def _():
            acc_ref[...] = jnp.zeros_like(acc_ref)

        acc_ref[...] += p

        @pl.when(k == nk - 1)
        def _():
            o_ref[...] = jnp.maximum(acc_ref[...], 0.0).astype(o_ref.dtype)


def prop_matmul(a_i8, drow, dcol, r, *, tm_t=512, tn_t=256, tk_t=1024):
    M, K = a_i8.shape            # M == K == padded node count
    Nc = r.shape[1]
    tm = _fit(M, tm_t, 32, min_blocks=2)   # int8 native sublane tiling is 32
    tn = _fit(Nc, tn_t, 128)
    tk = _fit(K, tk_t, 128)
    nk = K // tk
    grid = (M // tm, Nc // tn, nk)
    bytes_accessed = int(M * K + M * 4 + K * 4 + K * Nc * 2 + M * Nc * 2)
    return pl.pallas_call(
        functools.partial(_prop_kernel, tk=tk, nk=nk),
        out_shape=jax.ShapeDtypeStruct((M, Nc), jnp.bfloat16),
        grid_spec=pltpu.PrefetchScalarGridSpec(
            num_scalar_prefetch=0,
            grid=grid,
            in_specs=[
                pl.BlockSpec((tm, tk), lambda i, j, k: (i, k)),   # int8 A tile
                pl.BlockSpec((tm, 1), lambda i, j, k: (i, 0)),    # row scale
                pl.BlockSpec((1, tk), lambda i, j, k: (0, k)),    # col scale
                pl.BlockSpec((K, tn), lambda i, j, k: (0, j)),    # resident RHS
            ],
            out_specs=pl.BlockSpec((tm, tn), lambda i, j, k: (i, j)),
            scratch_shapes=[pltpu.VMEM((tm, tn), jnp.float32)],
        ),
        compiler_params=pltpu.CompilerParams(
            dimension_semantics=("parallel", "parallel", "arbitrary"),
            vmem_limit_bytes=_VMEM_LIMIT),
        cost_estimate=pl.CostEstimate(
            flops=2 * M * K * Nc + 4 * M * K, transcendentals=0,
            bytes_accessed=bytes_accessed),
    )(a_i8, drow, dcol, r)


# ---------------------------------------------------------------------------
# Fused classifier: logits = r0@w0 + r1@w1 + r2@w2, masked log-softmax over a
# lane-dense (128) padded class dimension.  No [N, 7H] concat needed.
# ---------------------------------------------------------------------------
def _classify_kernel(r0_ref, r1_ref, r2_ref, w0_ref, w1_ref, w2_ref, o_ref,
                     *, n_classes):
    logits = jnp.dot(r0_ref[...], w0_ref[...], preferred_element_type=jnp.float32)
    logits += jnp.dot(r1_ref[...], w1_ref[...], preferred_element_type=jnp.float32)
    logits += jnp.dot(r2_ref[...], w2_ref[...], preferred_element_type=jnp.float32)
    col = lax.broadcasted_iota(jnp.int32, logits.shape, 1)
    logits = jnp.where(col < n_classes, logits, -1e30)   # mask padded lanes
    m = jnp.max(logits, axis=1, keepdims=True)
    z = logits - m
    lse = jnp.log(jnp.sum(jnp.exp(z), axis=1, keepdims=True))
    o_ref[...] = z - lse


def classify_logsoftmax(r0, r1, r2, w0, w1, w2, n_classes, *, tm_t=256):
    Nr = r0.shape[0]
    Cp = w0.shape[1]
    tm = _fit(Nr, tm_t, 8, min_blocks=2)
    grid = (Nr // tm,)
    return pl.pallas_call(
        functools.partial(_classify_kernel, n_classes=n_classes),
        out_shape=jax.ShapeDtypeStruct((Nr, Cp), jnp.float32),
        grid_spec=pltpu.PrefetchScalarGridSpec(
            num_scalar_prefetch=0,
            grid=grid,
            in_specs=[
                pl.BlockSpec((tm, r0.shape[1]), lambda i: (i, 0)),
                pl.BlockSpec((tm, r1.shape[1]), lambda i: (i, 0)),
                pl.BlockSpec((tm, r2.shape[1]), lambda i: (i, 0)),
                pl.BlockSpec((w0.shape[0], Cp), lambda i: (0, 0)),
                pl.BlockSpec((w1.shape[0], Cp), lambda i: (0, 0)),
                pl.BlockSpec((w2.shape[0], Cp), lambda i: (0, 0)),
            ],
            out_specs=pl.BlockSpec((tm, Cp), lambda i: (i, 0)),
        ),
        compiler_params=pltpu.CompilerParams(
            dimension_semantics=("parallel",),
            vmem_limit_bytes=_VMEM_LIMIT),
    )(r0, r1, r2, w0, w1, w2)


# ---------------------------------------------------------------------------
# Forward pass
# ---------------------------------------------------------------------------
@jax.jit
def h2gcn_forward(x, a1_i8, a2_i8, d1, d2, w_embed, w_classify):
    """H2GCN forward (eval mode).

    a?_i8: [Np, Np] int8 0/1 indicator adjacencies (Np = N padded to 256).
    d?:    [Np, 1] f32 d^-1/2 scale vectors (zero for padded rows).
    """
    N, F = x.shape
    Np = a1_i8.shape[0]
    H = w_embed.shape[1]
    C = w_classify.shape[1]

    # pad nodes / features with zeros (zero rows stay exactly zero after relu)
    Fp = _round_up(F, 128)
    xb = jnp.pad(x, ((0, Np - N), (0, Fp - F))).astype(jnp.bfloat16)
    web = jnp.pad(w_embed, ((0, Fp - F), (0, 0))).astype(jnp.bfloat16)

    # r0 = relu(x @ w_embed)                                       [Np, H]
    r0 = matmul_bf16(xb, web, apply_relu=True)

    d1c = d1.reshape(1, Np)
    d2c = d2.reshape(1, Np)

    # round 1: r1 = relu([a1n @ r0 | a2n @ r0])                    [Np, 2H]
    p1 = prop_matmul(a1_i8, d1, d1c, r0)
    p2 = prop_matmul(a2_i8, d2, d2c, r0)
    r1 = jnp.concatenate([p1, p2], axis=1)

    # round 2: r2 = relu([a1n @ r1 | a2n @ r1])                    [Np, 4H]
    q1 = prop_matmul(a1_i8, d1, d1c, r1)
    q2 = prop_matmul(a2_i8, d2, d2c, r1)
    r2 = jnp.concatenate([q1, q2], axis=1)

    # classifier on [r0 | r1 | r2] without materializing the 7H slab
    Cp = _round_up(C, 128)
    wcb = w_classify.astype(jnp.bfloat16)
    pad_c = ((0, 0), (0, Cp - C))
    w0 = jnp.pad(wcb[:H], pad_c)
    w1 = jnp.pad(wcb[H:3 * H], pad_c)
    w2 = jnp.pad(wcb[3 * H:], pad_c)
    out_pad = classify_logsoftmax(r0, r1, r2, w0, w1, w2, C)
    return out_pad[:N, :C]


# ---------------------------------------------------------------------------
# One-time preprocessing (dense JAX equivalent of H2GCN._prepare_prop)
# ---------------------------------------------------------------------------
def prepare_prop(edge_index, n):
    adj = jnp.zeros((n, n), jnp.float32).at[edge_index[0], edge_index[1]].add(1.0)
    eye = jnp.eye(n, dtype=jnp.float32)
    a1 = jnp.where(adj - eye > 0, 1.0, 0.0)                 # indicator(A - I)
    a2 = jnp.where(adj @ adj - adj - eye > 0, 1.0, 0.0)     # indicator(A^2 - A - I)

    def dinv(a):
        d = jnp.sum(a, axis=1)
        return jnp.where(d > 0, lax.rsqrt(jnp.where(d > 0, d, 1.0)), 0.0)

    d1, d2 = dinv(a1), dinv(a2)
    a1n = d1[:, None] * a1 * d1[None, :]                    # reference operands
    a2n = d2[:, None] * a2 * d2[None, :]

    # kernel-side packed operands (padded node count, exact int8 indicators)
    np_pad = max(_round_up(n, 256), 256)
    pr = np_pad - n
    a1_i8 = jnp.pad(a1, ((0, pr), (0, pr))).astype(jnp.int8)
    a2_i8 = jnp.pad(a2, ((0, pr), (0, pr))).astype(jnp.int8)
    d1p = jnp.pad(d1, (0, pr))[:, None]
    d2p = jnp.pad(d2, (0, pr))[:, None]
    return (a1_i8, a2_i8, d1p, d2p), (a1n, a2n)


def xavier_uniform(key, shape):
    fan_in, fan_out = shape[1], shape[0]   # torch convention for 2-D tensors
    bound = math.sqrt(6.0 / (fan_in + fan_out))
    return jax.random.uniform(key, shape, jnp.float32, minval=-bound, maxval=bound)


def reference_forward(x, a1, a2, w_embed, w_classify):
    """Pure-JAX reference mirroring the PyTorch forward in eval mode, with the
    same bf16-input / f32-accumulation dot convention as the kernel path."""
    bf = lambda v: v.astype(jnp.bfloat16)
    dot = lambda a, b: jnp.dot(bf(a), bf(b), preferred_element_type=jnp.float32)
    relu = lambda v: jnp.maximum(v, 0.0)
    rs = [bf(relu(dot(x, w_embed)))]
    for _ in range(K_HOPS):
        r_last = rs[-1]
        rs.append(bf(relu(jnp.concatenate(
            [dot(a1, r_last), dot(a2, r_last)], axis=1))))
    r_final = jnp.concatenate(rs, axis=1)
    logits = dot(r_final, w_classify)
    return jax.nn.log_softmax(logits, axis=1)


if __name__ == "__main__":
    N, FEAT, HID, CLS = 256, 64, 32, 8

    key = jax.random.PRNGKey(0)
    k_x, k_e, k_we, k_wc = jax.random.split(key, 4)

    # node features
    x = jax.random.normal(k_x, (N, FEAT), jnp.float32)

    # random symmetrized edge list, shape [2, E]
    E = 4 * N
    src = jax.random.randint(k_e, (E,), 0, N)
    dst = jax.random.randint(jax.random.fold_in(k_e, 1), (E,), 0, N)
    edge_index = jnp.stack(
        [jnp.concatenate([src, dst]), jnp.concatenate([dst, src])], axis=0)

    # deterministic xavier-uniform parameters
    w_embed = xavier_uniform(k_we, (FEAT, HID))
    w_classify = xavier_uniform(k_wc, ((2 ** (K_HOPS + 1) - 1) * HID, CLS))

    # one-time adjacency preprocessing (plain JAX glue)
    (a1_i8, a2_i8, d1, d2), (a1n, a2n) = prepare_prop(edge_index, N)

    out = jax.block_until_ready(
        h2gcn_forward(x, a1_i8, a2_i8, d1, d2, w_embed, w_classify))

    ref = reference_forward(x, a1n, a2n, w_embed, w_classify)
    assert out.shape == (N, CLS)
    assert bool(jnp.all(jnp.isfinite(out)))
    assert jnp.allclose(out, ref, atol=2e-3, rtol=2e-3), float(
        jnp.max(jnp.abs(out - ref)))

    print("KERNEL_OK")
</pallas_src>

<mosaic_0001>
module attributes {stable_mosaic.version = 11 : i64} {
  func.func @_mm_kernel(%arg0: i32, %arg1: i32, %arg2: i32, %arg3: memref<128x128xbf16, #tpu.memory_space<vmem>>, %arg4: memref<128x32xbf16, #tpu.memory_space<vmem>>, %arg5: memref<128x32xbf16, #tpu.memory_space<vmem>>, %arg6: memref<128x32xf32, #tpu.memory_space<vmem>>) attributes {dimension_semantics = [#tpu.dimension_semantics<parallel>, #tpu.dimension_semantics<parallel>, #tpu.dimension_semantics<arbitrary>], iteration_bounds = array<i64: 2, 1, 1>, scalar_prefetch = 0 : i64, scratch_operands = 1 : i64, tpu.core_type = #tpu.core_type<tc>, window_params = [{transform_indices = @transform_0, window_bounds = array<i64: 128, 128>}, {transform_indices = @transform_1, window_bounds = array<i64: 128, 32>}, {transform_indices = @transform_2, window_bounds = array<i64: 128, 32>}]} {
    %c0 = arith.constant 0 : index
    %c0_0 = arith.constant 0 : index
    %0 = vector.load %arg3[%c0, %c0_0] : memref<128x128xbf16, #tpu.memory_space<vmem>>, vector<128x128xbf16>
    %c0_1 = arith.constant 0 : index
    %c0_2 = arith.constant 0 : index
    %1 = vector.load %arg4[%c0_1, %c0_2] : memref<128x32xbf16, #tpu.memory_space<vmem>>, vector<128x32xbf16>
    %cst = arith.constant dense<0.000000e+00> : vector<128x32xf32>
    %2 = tpu.matmul %0, %1, %cst {dimension_numbers = #tpu.dot_dimension_numbers<[1], [0], [0], [1], [0, 0, 1, 1], [], []>} : vector<128x128xbf16>, vector<128x32xbf16>, vector<128x32xf32> -> vector<128x32xf32>
    %cst_3 = arith.constant 0.000000e+00 : f32
    %3 = vector.broadcast %cst_3 : f32 to vector<128x32xf32>
    %4 = arith.maximumf %2, %3 : vector<128x32xf32>
    %5 = arith.truncf %4 : vector<128x32xf32> to vector<128x32xbf16>
    %c0_4 = arith.constant 0 : index
    %c0_5 = arith.constant 0 : index
    %6 = vector.load %arg5[%c0_4, %c0_5] : memref<128x32xbf16, #tpu.memory_space<vmem>>, vector<128x32xbf16>
    tpu.vector_store %arg5[%c0_4, %c0_5], %5 {strides = array<i32>} : memref<128x32xbf16, #tpu.memory_space<vmem>>, vector<128x32xbf16>,
    return
  }
  func.func @transform_0(%arg0: i32, %arg1: i32, %arg2: i32) -> (i32, i32) {
    %c0_i32 = arith.constant 0 : i32
    return %arg0, %arg2 : i32, i32
  }
  func.func @transform_1(%arg0: i32, %arg1: i32, %arg2: i32) -> (i32, i32) {
    %c0_i32 = arith.constant 0 : i32
    %c0_i32_0 = arith.constant 0 : i32
    return %c0_i32, %arg1 : i32, i32
  }
  func.func @transform_2(%arg0: i32, %arg1: i32, %arg2: i32) -> (i32, i32) {
    %c0_i32 = arith.constant 0 : i32
    return %arg0, %arg1 : i32, i32
  }
}

module attributes {stable_mosaic.version = 11 : i64} {
  func.func @_prop_kernel(%arg0: i32, %arg1: i32, %arg2: i32, %arg3: memref<128x256xi8, #tpu.memory_space<vmem>>, %arg4: memref<128x1xf32, #tpu.memory_space<vmem>>, %arg5: memref<1x256xf32, #tpu.memory_space<vmem>>, %arg6: memref<256x32xbf16, #tpu.memory_space<vmem>>, %arg7: memref<128x32xbf16, #tpu.memory_space<vmem>>, %arg8: memref<128x32xf32, #tpu.memory_space<vmem>>) attributes {dimension_semantics = [#tpu.dimension_semantics<parallel>, #tpu.dimension_semantics<parallel>, #tpu.dimension_semantics<arbitrary>], iteration_bounds = array<i64: 2, 1, 1>, scalar_prefetch = 0 : i64, scratch_operands = 1 : i64, tpu.core_type = #tpu.core_type<tc>, window_params = [{transform_indices = @transform_0, window_bounds = array<i64: 128, 256>}, {transform_indices = @transform_1, window_bounds = array<i64: 128, 1>}, {transform_indices = @transform_2, window_bounds = array<i64: 1, 256>}, {transform_indices = @transform_3, window_bounds = array<i64: 256, 32>}, {transform_indices = @transform_4, window_bounds = array<i64: 128, 32>}]} {
    %c0 = arith.constant 0 : index
    %c0_0 = arith.constant 0 : index
    %0 = vector.load %arg4[%c0, %c0_0] : memref<128x1xf32, #tpu.memory_space<vmem>>, vector<128x1xf32>
    %c0_1 = arith.constant 0 : index
    %c0_2 = arith.constant 0 : index
    %1 = vector.load %arg5[%c0_1, %c0_2] : memref<1x256xf32, #tpu.memory_space<vmem>>, vector<1x256xf32>
    %2 = vector.broadcast %0 : vector<128x1xf32> to vector<128x256xf32>
    %3 = vector.broadcast %1 : vector<1x256xf32> to vector<128x256xf32>
    %4 = arith.mulf %2, %3 : vector<128x256xf32>
    %c0_3 = arith.constant 0 : index
    %c0_4 = arith.constant 0 : index
    %5 = vector.load %arg3[%c0_3, %c0_4] : memref<128x256xi8, #tpu.memory_space<vmem>>, vector<128x256xi8>
    %6 = arith.sitofp %5 : vector<128x256xi8> to vector<128x256xf32>
    %7 = arith.mulf %4, %6 : vector<128x256xf32>
    %8 = arith.truncf %7 : vector<128x256xf32> to vector<128x256xbf16>
    %c0_5 = arith.constant 0 : index
    %c0_6 = arith.constant 0 : index
    %9 = vector.load %arg6[%c0_5, %c0_6] : memref<256x32xbf16, #tpu.memory_space<vmem>>, vector<256x32xbf16>
    %cst = arith.constant dense<0.000000e+00> : vector<128x32xf32>
    %10 = tpu.matmul %8, %9, %cst {dimension_numbers = #tpu.dot_dimension_numbers<[1], [0], [0], [1], [0, 0, 1, 1], [], []>} : vector<128x256xbf16>, vector<256x32xbf16>, vector<128x32xf32> -> vector<128x32xf32>
    %cst_7 = arith.constant 0.000000e+00 : f32
    %11 = vector.broadcast %cst_7 : f32 to vector<128x32xf32>
    %12 = arith.maximumf %10, %11 : vector<128x32xf32>
    %13 = arith.truncf %12 : vector<128x32xf32> to vector<128x32xbf16>
    %c0_8 = arith.constant 0 : index
    %c0_9 = arith.constant 0 : index
    %14 = vector.load %arg7[%c0_8, %c0_9] : memref<128x32xbf16, #tpu.memory_space<vmem>>, vector<128x32xbf16>
    tpu.vector_store %arg7[%c0_8, %c0_9], %13 {strides = array<i32>} : memref<128x32xbf16, #tpu.memory_space<vmem>>, vector<128x32xbf16>,
    return
  }
  func.func @transform_0(%arg0: i32, %arg1: i32, %arg2: i32) -> (i32, i32) {
    %c0_i32 = arith.constant 0 : i32
    return %arg0, %arg2 : i32, i32
  }
  func.func @transform_1(%arg0: i32, %arg1: i32, %arg2: i32) -> (i32, i32) {
    %c0_i32 = arith.constant 0 : i32
    %c0_i32_0 = arith.constant 0 : i32
    return %arg0, %c0_i32 : i32, i32
  }
  func.func @transform_2(%arg0: i32, %arg1: i32, %arg2: i32) -> (i32, i32) {
    %c0_i32 = arith.constant 0 : i32
    %c0_i32_0 = arith.constant 0 : i32
    return %c0_i32, %arg2 : i32, i32
  }
  func.func @transform_3(%arg0: i32, %arg1: i32, %arg2: i32) -> (i32, i32) {
    %c0_i32 = arith.constant 0 : i32
    %c0_i32_0 = arith.constant 0 : i32
    return %c0_i32, %arg1 : i32, i32
  }
  func.func @transform_4(%arg0: i32, %arg1: i32, %arg2: i32) -> (i32, i32) {
    %c0_i32 = arith.constant 0 : i32
    return %arg0, %arg1 : i32, i32
  }
}

module attributes {stable_mosaic.version = 11 : i64} {
  func.func @_prop_kernel(%arg0: i32, %arg1: i32, %arg2: i32, %arg3: memref<128x256xi8, #tpu.memory_space<vmem>>, %arg4: memref<128x1xf32, #tpu.memory_space<vmem>>, %arg5: memref<1x256xf32, #tpu.memory_space<vmem>>, %arg6: memref<256x64xbf16, #tpu.memory_space<vmem>>, %arg7: memref<128x64xbf16, #tpu.memory_space<vmem>>, %arg8: memref<128x64xf32, #tpu.memory_space<vmem>>) attributes {dimension_semantics = [#tpu.dimension_semantics<parallel>, #tpu.dimension_semantics<parallel>, #tpu.dimension_semantics<arbitrary>], iteration_bounds = array<i64: 2, 1, 1>, scalar_prefetch = 0 : i64, scratch_operands = 1 : i64, tpu.core_type = #tpu.core_type<tc>, window_params = [{transform_indices = @transform_0, window_bounds = array<i64: 128, 256>}, {transform_indices = @transform_1, window_bounds = array<i64: 128, 1>}, {transform_indices = @transform_2, window_bounds = array<i64: 1, 256>}, {transform_indices = @transform_3, window_bounds = array<i64: 256, 64>}, {transform_indices = @transform_4, window_bounds = array<i64: 128, 64>}]} {
    %c0 = arith.constant 0 : index
    %c0_0 = arith.constant 0 : index
    %0 = vector.load %arg4[%c0, %c0_0] : memref<128x1xf32, #tpu.memory_space<vmem>>, vector<128x1xf32>
    %c0_1 = arith.constant 0 : index
    %c0_2 = arith.constant 0 : index
    %1 = vector.load %arg5[%c0_1, %c0_2] : memref<1x256xf32, #tpu.memory_space<vmem>>, vector<1x256xf32>
    %2 = vector.broadcast %0 : vector<128x1xf32> to vector<128x256xf32>
    %3 = vector.broadcast %1 : vector<1x256xf32> to vector<128x256xf32>
    %4 = arith.mulf %2, %3 : vector<128x256xf32>
    %c0_3 = arith.constant 0 : index
    %c0_4 = arith.constant 0 : index
    %5 = vector.load %arg3[%c0_3, %c0_4] : memref<128x256xi8, #tpu.memory_space<vmem>>, vector<128x256xi8>
    %6 = arith.sitofp %5 : vector<128x256xi8> to vector<128x256xf32>
    %7 = arith.mulf %4, %6 : vector<128x256xf32>
    %8 = arith.truncf %7 : vector<128x256xf32> to vector<128x256xbf16>
    %c0_5 = arith.constant 0 : index
    %c0_6 = arith.constant 0 : index
    %9 = vector.load %arg6[%c0_5, %c0_6] : memref<256x64xbf16, #tpu.memory_space<vmem>>, vector<256x64xbf16>
    %cst = arith.constant dense<0.000000e+00> : vector<128x64xf32>
    %10 = tpu.matmul %8, %9, %cst {dimension_numbers = #tpu.dot_dimension_numbers<[1], [0], [0], [1], [0, 0, 1, 1], [], []>} : vector<128x256xbf16>, vector<256x64xbf16>, vector<128x64xf32> -> vector<128x64xf32>
    %cst_7 = arith.constant 0.000000e+00 : f32
    %11 = vector.broadcast %cst_7 : f32 to vector<128x64xf32>
    %12 = arith.maximumf %10, %11 : vector<128x64xf32>
    %13 = arith.truncf %12 : vector<128x64xf32> to vector<128x64xbf16>
    %c0_8 = arith.constant 0 : index
    %c0_9 = arith.constant 0 : index
    %14 = vector.load %arg7[%c0_8, %c0_9] : memref<128x64xbf16, #tpu.memory_space<vmem>>, vector<128x64xbf16>
    tpu.vector_store %arg7[%c0_8, %c0_9], %13 {strides = array<i32>} : memref<128x64xbf16, #tpu.memory_space<vmem>>, vector<128x64xbf16>,
    return
  }
  func.func @transform_0(%arg0: i32, %arg1: i32, %arg2: i32) -> (i32, i32) {
    %c0_i32 = arith.constant 0 : i32
    return %arg0, %arg2 : i32, i32
  }
  func.func @transform_1(%arg0: i32, %arg1: i32, %arg2: i32) -> (i32, i32) {
    %c0_i32 = arith.constant 0 : i32
    %c0_i32_0 = arith.constant 0 : i32
    return %arg0, %c0_i32 : i32, i32
  }
  func.func @transform_2(%arg0: i32, %arg1: i32, %arg2: i32) -> (i32, i32) {
    %c0_i32 = arith.constant 0 : i32
    %c0_i32_0 = arith.constant 0 : i32
    return %c0_i32, %arg2 : i32, i32
  }
  func.func @transform_3(%arg0: i32, %arg1: i32, %arg2: i32) -> (i32, i32) {
    %c0_i32 = arith.constant 0 : i32
    %c0_i32_0 = arith.constant 0 : i32
    return %c0_i32, %arg1 : i32, i32
  }
  func.func @transform_4(%arg0: i32, %arg1: i32, %arg2: i32) -> (i32, i32) {
    %c0_i32 = arith.constant 0 : i32
    return %arg0, %arg1 : i32, i32
  }
}

module attributes {stable_mosaic.version = 11 : i64} {
  func.func @_classify_kernel(%arg0: i32, %arg1: memref<128x32xbf16, #tpu.memory_space<vmem>>, %arg2: memref<128x64xbf16, #tpu.memory_space<vmem>>, %arg3: memref<128x128xbf16, #tpu.memory_space<vmem>>, %arg4: memref<32x128xbf16, #tpu.memory_space<vmem>>, %arg5: memref<64x128xbf16, #tpu.memory_space<vmem>>, %arg6: memref<128x128xbf16, #tpu.memory_space<vmem>>, %arg7: memref<128x128xf32, #tpu.memory_space<vmem>>) attributes {dimension_semantics = [#tpu.dimension_semantics<parallel>], iteration_bounds = array<i64: 2>, scalar_prefetch = 0 : i64, scratch_operands = 0 : i64, tpu.core_type = #tpu.core_type<tc>, window_params = [{transform_indices = @transform_0, window_bounds = array<i64: 128, 32>}, {transform_indices = @transform_1, window_bounds = array<i64: 128, 64>}, {transform_indices = @transform_2, window_bounds = array<i64: 128, 128>}, {pipeline_mode = #tpu.pipeline_mode<synchronous>, transform_indices = @transform_3, window_bounds = array<i64: 32, 128>}, {pipeline_mode = #tpu.pipeline_mode<synchronous>, transform_indices = @transform_4, window_bounds = array<i64: 64, 128>}, {pipeline_mode = #tpu.pipeline_mode<synchronous>, transform_indices = @transform_5, window_bounds = array<i64: 128, 128>}, {transform_indices = @transform_6, window_bounds = array<i64: 128, 128>}]} {
    %c0 = arith.constant 0 : index
    %c0_0 = arith.constant 0 : index
    %0 = vector.load %arg1[%c0, %c0_0] : memref<128x32xbf16, #tpu.memory_space<vmem>>, vector<128x32xbf16>
    %c0_1 = arith.constant 0 : index
    %c0_2 = arith.constant 0 : index
    %1 = vector.load %arg4[%c0_1, %c0_2] : memref<32x128xbf16, #tpu.memory_space<vmem>>, vector<32x128xbf16>
    %cst = arith.constant dense<0.000000e+00> : vector<128x128xf32>
    %2 = tpu.matmul %0, %1, %cst {dimension_numbers = #tpu.dot_dimension_numbers<[1], [0], [0], [1], [0, 0, 1, 1], [], []>} : vector<128x32xbf16>, vector<32x128xbf16>, vector<128x128xf32> -> vector<128x128xf32>
    %c0_3 = arith.constant 0 : index
    %c0_4 = arith.constant 0 : index
    %3 = vector.load %arg2[%c0_3, %c0_4] : memref<128x64xbf16, #tpu.memory_space<vmem>>, vector<128x64xbf16>
    %c0_5 = arith.constant 0 : index
    %c0_6 = arith.constant 0 : index
    %4 = vector.load %arg5[%c0_5, %c0_6] : memref<64x128xbf16, #tpu.memory_space<vmem>>, vector<64x128xbf16>
    %cst_7 = arith.constant dense<0.000000e+00> : vector<128x128xf32>
    %5 = tpu.matmul %3, %4, %cst_7 {dimension_numbers = #tpu.dot_dimension_numbers<[1], [0], [0], [1], [0, 0, 1, 1], [], []>} : vector<128x64xbf16>, vector<64x128xbf16>, vector<128x128xf32> -> vector<128x128xf32>
    %6 = arith.addf %2, %5 : vector<128x128xf32>
    %c0_8 = arith.constant 0 : index
    %c0_9 = arith.constant 0 : index
    %7 = vector.load %arg3[%c0_8, %c0_9] : memref<128x128xbf16, #tpu.memory_space<vmem>>, vector<128x128xbf16>
    %c0_10 = arith.constant 0 : index
    %c0_11 = arith.constant 0 : index
    %8 = vector.load %arg6[%c0_10, %c0_11] : memref<128x128xbf16, #tpu.memory_space<vmem>>, vector<128x128xbf16>
    %cst_12 = arith.constant dense<0.000000e+00> : vector<128x128xf32>
    %9 = tpu.matmul %7, %8, %cst_12 {dimension_numbers = #tpu.dot_dimension_numbers<[1], [0], [0], [1], [0, 0, 1, 1], [], []>} : vector<128x128xbf16>, vector<128x128xbf16>, vector<128x128xf32> -> vector<128x128xf32>
    %10 = arith.addf %6, %9 : vector<128x128xf32>
    %11 = tpu.iota {dimensions = array<i32: 1>} : vector<128x128xi32>
    %c8_i32 = arith.constant 8 : i32
    %12 = vector.broadcast %c8_i32 : i32 to vector<128x128xi32>
    %13 = arith.cmpi slt, %11, %12 : vector<128x128xi32>
    %cst_13 = arith.constant -1.000000e+30 : f32
    %14 = vector.broadcast %cst_13 : f32 to vector<128x128xf32>
    %15 = arith.select %13, %10, %14 : vector<128x128xi1>, vector<128x128xf32>
    %cst_14 = arith.constant dense<0xFF800000> : vector<128xf32>
    %16 = vector.multi_reduction <maximumf>, %15, %cst_14 [1] : vector<128x128xf32> to vector<128xf32>
    %17 = vector.shape_cast %16 : vector<128xf32> to vector<128x1xf32>
    %18 = vector.broadcast %17 : vector<128x1xf32> to vector<128x128xf32>
    %19 = arith.subf %15, %18 : vector<128x128xf32>
    %20 = math.exp %19 : vector<128x128xf32>
    %cst_15 = arith.constant dense<0.000000e+00> : vector<128xf32>
    %21 = vector.multi_reduction <add>, %20, %cst_15 [1] : vector<128x128xf32> to vector<128xf32>
    %22 = vector.shape_cast %21 : vector<128xf32> to vector<128x1xf32>
    %23 = math.log %22 : vector<128x1xf32>
    %24 = vector.broadcast %23 : vector<128x1xf32> to vector<128x128xf32>
    %25 = arith.subf %19, %24 : vector<128x128xf32>
    %c0_16 = arith.constant 0 : index
    %c0_17 = arith.constant 0 : index
    %26 = vector.load %arg7[%c0_16, %c0_17] : memref<128x128xf32, #tpu.memory_space<vmem>>, vector<128x128xf32>
    tpu.vector_store %arg7[%c0_16, %c0_17], %25 {strides = array<i32>} : memref<128x128xf32, #tpu.memory_space<vmem>>, vector<128x128xf32>,
    return
  }
  func.func @transform_0(%arg0: i32) -> (i32, i32) {
    %c0_i32 = arith.constant 0 : i32
    %c0_i32_0 = arith.constant 0 : i32
    return %arg0, %c0_i32 : i32, i32
  }
  func.func @transform_1(%arg0: i32) -> (i32, i32) {
    %c0_i32 = arith.constant 0 : i32
    %c0_i32_0 = arith.constant 0 : i32
    return %arg0, %c0_i32 : i32, i32
  }
  func.func @transform_2(%arg0: i32) -> (i32, i32) {
    %c0_i32 = arith.constant 0 : i32
    %c0_i32_0 = arith.constant 0 : i32
    return %arg0, %c0_i32 : i32, i32
  }
  func.func @transform_3(%arg0: i32) -> (i32, i32) {
    %c0_i32 = arith.constant 0 : i32
    %c0_i32_0 = arith.constant 0 : i32
    %c0_i32_1 = arith.constant 0 : i32
    return %c0_i32, %c0_i32_0 : i32, i32
  }
  func.func @transform_4(%arg0: i32) -> (i32, i32) {
    %c0_i32 = arith.constant 0 : i32
    %c0_i32_0 = arith.constant 0 : i32
    %c0_i32_1 = arith.constant 0 : i32
    return %c0_i32, %c0_i32_0 : i32, i32
  }
  func.func @transform_5(%arg0: i32) -> (i32, i32) {
    %c0_i32 = arith.constant 0 : i32
    %c0_i32_0 = arith.constant 0 : i32
    %c0_i32_1 = arith.constant 0 : i32
    return %c0_i32, %c0_i32_0 : i32, i32
  }
  func.func @transform_6(%arg0: i32) -> (i32, i32) {
    %c0_i32 = arith.constant 0 : i32
    %c0_i32_0 = arith.constant 0 : i32
    return %arg0, %c0_i32 : i32, i32
  }
}

</mosaic_0001>

<bundles_post_ra>
// kernel: h2gcn_forward.9
= control target key start
LH: loop header
LB: loop body
LE: loop exit
PB: predicated region body
PF: predicated region fallthrough
CT: control target
= control target key end

     0   :  { %s1148_s15 = smov 0   ;;  %s1150_s16 = smov 0   ;;  %s1377_s0 = inlined_call_operand.vmem [shape: s8[256,256], index: 0, kind: input, shape index: {}]   ;;  %s1378_s1 = inlined_call_operand.vmem [shape: f32[256,1], index: 1, kind: input, shape index: {}]   ;;  %s1379_s2 = inlined_call_operand.vmem [shape: f32[1,256], index: 2, kind: input, shape index: {}]   ;;  %s1380_s3 = inlined_call_operand.vmem [shape: bf16[256,64], index: 3, kind: input, shape index: {}]   ;;  %s1381_s4 = inlined_call_operand.vmem [shape: bf16[256,64], index: 4, kind: output, shape index: {}]  }
   0x1   :  { %s1152_s17 = smov 0  }
   0x2 LB: > { %s33_s18 = sadd.s32 1, %s1116_s16  ;;  %p963_p0 = scmp.ge.s32.totalorder %s1120_s17, 1  ;;  %s1120_s17 = sphi %s1152_s17, %s14_s17   ;;  %s1116_s16 = sphi %s1150_s16, %s1383_s16   ;;  %s1112_s15 = sphi %s1148_s15, %s1382_s15  }
   0x3   : > { %p35_p1 = scmp.ge.s32.totalorder %s33_s18, 2  ;;  %p222_p2 = scmp.lt.s32.totalorder %s1120_s17, 3 }
   0x5   : > { %s1385_s18 = smov (%p35_p1, %s33_s18), 0  ;;  %p223_p3 = pnand %p963_p0, %p222_p2 }
   0x6   : > { %s967_s19 = sshll.u32 (!%p223_p3), %s1112_s15, 4  ;;  %s964_s9 = sshll.u32 (!%p223_p3), %s1112_s15, 2 }
   0x7   : > { %226 = sbr.rel (%p223_p3) target bundleno = 340 (0x154), region = 36  ;;  %p282_p4 = scmp.lt.s32.totalorder (!%p223_p3), %s967_s19, 31 }
   0x8   : > { %p271_p5 = scmp.lt.s32.totalorder (!%p223_p3), %s964_s9, 7 }
   0xc   : > { %v1122_v0 = vmov 0   ;;  %s1387_s19 = smov (!%p282_p4, %s967_s19), 31  ;;  %v1045_v7 = vld [vmem:[%s1380_s3 + $0x38] sm:$0xff]  ;;  %v1044_v19 = vld [vmem:[%s1380_s3 + $0x30] sm:$0xff]  ;;  %v1043_v21 = vld [vmem:[%s1380_s3 + $0x28] sm:$0xff]  ;;  %s1389_s9 = smov (!%p271_p5, %s964_s9), 7 }
   0xd   : > { %1096 = vset.pattern.permute.xlu1 %v1122_v0  ;;  %1095 = vset.pattern.permute.xlu0 %v1122_v0  ;;  %s968_s20 = sshll.u32 %s1387_s19, 3  ;;  %v1053_v8 = vld [vmem:[%s1380_s3 + $0x78] sm:$0xff]  ;;  %v1052_v20 = vld [vmem:[%s1380_s3 + $0x70] sm:$0xff]  ;;  %v1051_v22 = vld [vmem:[%s1380_s3 + $0x68] sm:$0xff]  ;;  %s1037_s10 = sshll.u32 %s1389_s9, 4  ;;  %vm817_vm0 = vcmask 519168  }
   0xe   : > { %1097 = vset.pattern.permute.xlu2 %v1122_v0  ;;  %s1175_s23 = scalar_lea.vmem %s1378_s1, %s968_s20  ;;  %687 = vmatpush.bf16.msra.mxu0 %v1045_v7  ;;  %v1042_v23 = vld [vmem:[%s1380_s3 + $0x20] sm:$0xff]  ;;  %v1041_v25 = vld [vmem:[%s1380_s3 + $0x18] sm:$0xff]  ;;  %v1040_v27 = vld [vmem:[%s1380_s3 + $0x10] sm:$0xff]  ;;  %s1245_s13 = scalar_lea.vmem %s1377_s0, %s1037_s10 }
   0xf   : > { %v313_v1 = vld [vmem:[%s1175_s23 + $0x40] sm:$0xff]  ;;  %v315_v3 = vld [vmem:[%s1175_s23 + $0x50] sm:$0xff]  ;;  %v314_v4 = vld [vmem:[%s1175_s23 + $0x48] sm:$0xff]  ;;  %1054 = vmatpush.bf16.msra.mxu2 %v1045_v7  ;;  %736 = vmatpush.bf16.msra.mxu1 %v1053_v8  ;;  %s970_s20 = sshll.u32 %s1387_s19, 2 }
  0x10   : > { %v305_v2 = vld [vmem:[%s1175_s23] sm:$0xff]  ;;  %364 = vperm.xlu0 %1095, %v313_v1   ;;  %374 = vperm.xlu2 %1097, %v315_v3   ;;  %v306_v5 = vld [vmem:[%s1175_s23 + $0x8] sm:$0xff]  ;;  %v316_v6 = vld [vmem:[%s1175_s23 + $0x58] sm:$0xff] }
  0x11   : > { %324 = vperm.xlu1 %1096, %v305_v2   ;;  %1062 = vmatpush.bf16.msra.mxu3 %v1053_v8  ;;  %v307_v9 = vld [vmem:[%s1175_s23 + $0x10] sm:$0xff]  ;;  %v308_v10 = vld [vmem:[%s1175_s23 + $0x18] sm:$0xff]  ;;  %v317_v11 = vld [vmem:[%s1175_s23 + $0x60] sm:$0xff] }
  0x12   : > { %v318_v12 = vld [vmem:[%s1175_s23 + $0x68] sm:$0xff]  ;;  %v309_v13 = vld [vmem:[%s1175_s23 + $0x20] sm:$0xff]  ;;  %v319_v15 = vld [vmem:[%s1175_s23 + $0x70] sm:$0xff]  ;;  %688 = vmatpush.bf16.msra.mxu0 %v1044_v19 }
  0x13   : > { %v310_v14 = vld [vmem:[%s1175_s23 + $0x28] sm:$0xff]  ;;  %v320_v16 = vld [vmem:[%s1175_s23 + $0x78] sm:$0xff]  ;;  %v311_v17 = vld [vmem:[%s1175_s23 + $0x30] sm:$0xff]  ;;  %1055 = vmatpush.bf16.msra.mxu2 %v1044_v19  ;;  %737 = vmatpush.bf16.msra.mxu1 %v1052_v20 }
  0x14   : > { %v312_v18 = vld [vmem:[%s1175_s23 + $0x38] sm:$0xff]  ;;  %v1050_v24 = vld [vmem:[%s1380_s3 + $0x60] sm:$0xff]  ;;  %v1048_v28 = vld [vmem:[%s1380_s3 + $0x50] sm:$0xff]  ;;  %s1334_s23 = scalar_lea.vmem %s1381_s4, %s970_s20 }
  0x15   : > { %1063 = vmatpush.bf16.msra.mxu3 %v1052_v20  ;;  %v1049_v26 = vld [vmem:[%s1380_s3 + $0x58] sm:$0xff]  ;;  %v1039_v29 = vld [vmem:[%s1380_s3 + $0x8] sm:$0xff]  ;;  %v1038_v31 = vld [vmem:[%s1380_s3] sm:$0xff] }
  0x16   : > { %689 = vmatpush.bf16.msra.mxu0 %v1043_v21  ;;  %v1047_v30 = vld [vmem:[%s1380_s3 + $0x48] sm:$0xff]  ;;  %v1046_v32 = vld [vmem:[%s1380_s3 + $0x40] sm:$0xff] }
  0x17   : > { %1056 = vmatpush.bf16.msra.mxu2 %v1043_v21  ;;  %738 = vmatpush.bf16.msra.mxu1 %v1051_v22  ;;  %v1248_v33 = vld [vmem:[%s1245_s13 + $0x20] sm:$0xff]  ;;  %v1254_v35 = vld [vmem:[%s1245_s13 + $0x8] sm:$0xff] }
  0x18   : > { %369 = vperm.xlu0 %1095, %v314_v4   ;;  %379 = vperm.xlu2 %1097, %v316_v6   ;;  %v1251_v34 = vld [vmem:[%s1245_s13] sm:$0xff]  ;;  %v1257_v36 = vld [vmem:[%s1245_s13 + $0x28] sm:$0xff]  ;;  %v463_v41 = vunpack.c.0.s8 %v1248_v33  ;;  %v448_v42 = vunpack.c.0.s8 %v1254_v35  ;;  %v465_v47 = vunpack.c.1.s8 %v1248_v33  ;;  %v450_v48 = vunpack.c.1.s8 %v1254_v35 }
  0x19   : > { %329 = vperm.xlu1 %1096, %v306_v5   ;;  %1064 = vmatpush.bf16.msra.mxu3 %v1051_v22  ;;  %v321_v37 = vld [vmem:[%s1379_s2] sm:$0x3]  ;;  %v447_v40 = vunpack.c.0.s8 %v1251_v34  ;;  %v464_v43 = vunpack.c.0.s8 %v1257_v36  ;;  %v449_v46 = vunpack.c.1.s8 %v1251_v34  ;;  %v466_v49 = vunpack.c.1.s8 %v1257_v36 }
  0x1a   : > { %690 = vmatpush.bf16.msra.mxu0 %v1042_v23  ;;  %v1266_v44 = vperm.slane %v321_v37, 0  ;;  %v1268_v45 = vperm.slane %v321_v37, 1  ;;  %v495_v51 = vcvt.s32.f32 %v463_v41  ;;  %v480_v52 = vcvt.s32.f32 %v448_v42 }
  0x1b   : > { %1057 = vmatpush.bf16.msra.mxu2 %v1042_v23  ;;  %739 = vmatpush.bf16.msra.mxu1 %v1050_v24  ;;  %v479_v50 = vcvt.s32.f32 %v447_v40  ;;  %v496_v53 = vcvt.s32.f32 %v464_v43  ;;  %v481_v59 = vcvt.s32.f32 %v449_v46  ;;  %v497_v60 = vcvt.s32.f32 %v465_v47 }
  0x1c   : > { %v482_v61 = vcvt.s32.f32 %v450_v48  ;;  %v498_v62 = vcvt.s32.f32 %v466_v49  ;;  %v467_v19 = vunpack.c.2.s8 %v1248_v33  ;;  %v469_v20 = vunpack.c.3.s8 %v1248_v33 }
  0x1d   : > { %1065 = vmatpush.bf16.msra.mxu3 %v1050_v24  ;;  %v452_v22 = vunpack.c.2.s8 %v1254_v35  ;;  %v454_v23 = vunpack.c.3.s8 %v1254_v35 }
  0x1e   : > { %691 = vmatpush.bf16.msra.mxu0 %v1041_v25  ;;  %v501_v37 = vcvt.s32.f32 %v469_v20 }
  0x1f   : > { %1058 = vmatpush.bf16.msra.mxu2 %v1041_v25  ;;  %740 = vmatpush.bf16.msra.mxu1 %v1049_v26  ;;  %v486_v40 = vcvt.s32.f32 %v454_v23 }
  0x20   : > { %334 = vperm.xlu0 %1095, %v307_v9   ;;  %384 = vperm.xlu2 %1097, %v317_v11  }
  0x21   : > { %339 = vperm.xlu1 %1096, %v308_v10   ;;  %1066 = vmatpush.bf16.msra.mxu3 %v1049_v26  ;;  %v468_v26 = vunpack.c.2.s8 %v1257_v36 }
  0x22   : > { %692 = vmatpush.bf16.msra.mxu0 %v1040_v27 }
  0x23   : > { %1059 = vmatpush.bf16.msra.mxu2 %v1040_v27  ;;  %741 = vmatpush.bf16.msra.mxu1 %v1048_v28  ;;  %v470_v27 = vunpack.c.3.s8 %v1257_v36  ;;  %v500_v42 = vcvt.s32.f32 %v468_v26 }
  0x25   : > { %1067 = vmatpush.bf16.msra.mxu3 %v1048_v28  ;;  %v502_v43 = vcvt.s32.f32 %v470_v27 }
  0x26   : > { %693 = vmatpush.bf16.msra.mxu0 %v1039_v29 }
  0x27   : > { %1060 = vmatpush.bf16.msra.mxu2 %v1039_v29  ;;  %742 = vmatpush.bf16.msra.mxu1 %v1047_v30 }
  0x28   : > { %389 = vperm.xlu0 %1095, %v318_v12   ;;  %349 = vperm.xlu2 %1097, %v310_v14  }
  0x29   : > { %344 = vperm.xlu1 %1096, %v309_v13   ;;  %1068 = vmatpush.bf16.msra.mxu3 %v1047_v30 }
  0x2a   : > { %694 = vmatpush.bf16.msra.mxu0 %v1038_v31 }
  0x2b   : > { %1061 = vmatpush.bf16.msra.mxu2 %v1038_v31  ;;  %743 = vmatpush.bf16.msra.mxu1 %v1046_v32 }
  0x2d   : > { %1069 = vmatpush.bf16.msra.mxu3 %v1046_v32 }
  0x30   : > { %394 = vperm.xlu0 %1095, %v319_v15   ;;  %354 = vperm.xlu2 %1097, %v311_v17   ;;  %v451_v17 = vunpack.c.2.s8 %v1251_v34 }
  0x31   : > { %399 = vperm.xlu1 %1096, %v320_v16  }
  0x32   : > { %v483_v32 = vcvt.s32.f32 %v451_v17 }
  0x38   : > { %359 = vperm.xlu0 %1095, %v312_v18   ;;  %v453_v18 = vunpack.c.3.s8 %v1251_v34  ;;  %v499_v34 = vcvt.s32.f32 %v467_v19 }
  0x3a   : > { %v485_v33 = vcvt.s32.f32 %v453_v18 }
  0x6a   : > { %v375_v58 = vpop.permute.xlu2 %374 }
  0x6b   : > { %v427_v28 = vmul.f32 %v1266_v44, %v375_v58  ;;  %v428_v29 = vmul.f32 %v1268_v45, %v375_v58 }
  0x6d   : > { %v531_v48 = vmul.f32 %v499_v34, %v427_v28 }
  0x72   : > { %v380_v21 = vpop.permute.xlu2 %379 }
  0x73   : > { %v429_v30 = vmul.f32 %v1266_v44, %v380_v21  ;;  %v430_v31 = vmul.f32 %v1268_v45, %v380_v21 }
  0x75   : > { %v533_v49 = vmul.f32 %v501_v37, %v429_v30 }
  0x82   : > { %v365_v38 = vpop.permute.xlu0 %364 }
  0x83   : > { %v325_v39 = vpop.permute.xlu1 %324  ;;  %v423_v54 = vmul.f32 %v1266_v44, %v365_v38  ;;  %v424_v55 = vmul.f32 %v1268_v45, %v365_v38 }
  0x84   : > { %v407_v56 = vmul.f32 %v1266_v44, %v325_v39  ;;  %v408_v57 = vmul.f32 %v1268_v45, %v325_v39  ;;  %v484_v39 = vcvt.s32.f32 %v452_v22 }
  0x85   : > { %v527_v6 = vmul.f32 %v495_v51, %v423_v54  ;;  %v528_v8 = vmul.f32 %v496_v53, %v424_v55  ;;  %v534_v53 = vmul.f32 %v502_v43, %v430_v31  ;;  %v385_v54 = vpop.permute.xlu2 %384 }
  0x86   : > { %v511_v5 = vmul.f32 %v479_v50, %v407_v56  ;;  %v512_v7 = vmul.f32 %v480_v52, %v408_v57  ;;  %v532_v52 = vmul.f32 %v500_v42, %v428_v29  ;;  %v553_v56 = vpack.c.bf16 %v533_v49, %v531_v48 }
  0x87   : > { %v431_v18 = vmul.f32 %v1266_v44, %v385_v54  ;;  %v432_v22 = vmul.f32 %v1268_v45, %v385_v54 }
  0x8a   : > { %v370_v63 = vpop.permute.xlu0 %369 }
  0x8b   : > { %v330_v0 = vpop.permute.xlu1 %329  ;;  %v425_v1 = vmul.f32 %v1266_v44, %v370_v63  ;;  %v426_v2 = vmul.f32 %v1268_v45, %v370_v63  ;;  %v446_v63 = vld [vmem:[%s1245_s13 + $0x38] sm:$0xff] }
  0x8c   : > { %v409_v3 = vmul.f32 %v1266_v44, %v330_v0  ;;  %v410_v4 = vmul.f32 %v1268_v45, %v330_v0  ;;  %v476_v42 = vunpack.c.2.s8 %v446_v63 }
  0x8d   : > { %v529_v10 = vmul.f32 %v497_v60, %v425_v1  ;;  %v530_v12 = vmul.f32 %v498_v62, %v426_v2  ;;  %v1299_v60 = vld [vmem:[%s1245_s13 + $0x10] sm:$0xff]  ;;  %v1303_v62 = vld [vmem:[%s1245_s13 + $0x18] sm:$0xff] }
  0x8e   : > { %v513_v9 = vmul.f32 %v481_v59, %v409_v3  ;;  %v514_v11 = vmul.f32 %v482_v61, %v410_v4  ;;  %v554_v59 = vpack.c.bf16 %v534_v53, %v532_v52  ;;  %v445_v61 = vld [vmem:[%s1245_s13 + $0x30] sm:$0xff]  ;;  %v455_v0 = vunpack.c.0.s8 %v1299_v60 }
  0x8f   : > { %v551_v14 = vpack.c.bf16 %v529_v10, %v527_v6  ;;  %v552_v16 = vpack.c.bf16 %v530_v12, %v528_v8  ;;  %v473_v1 = vunpack.c.1.s8 %v445_v61  ;;  %v456_v3 = vunpack.c.0.s8 %v1303_v62 }
  0x90   : > { %v543_v13 = vpack.c.bf16 %v513_v9, %v511_v5  ;;  %v544_v15 = vpack.c.bf16 %v514_v11, %v512_v7  ;;  %v474_v4 = vunpack.c.1.s8 %v446_v63  ;;  %v457_v5 = vunpack.c.1.s8 %v1299_v60 }
  0x91   : > { %715 = vmatmul.bf16.vlgmr.msra.gmra.mxu2 %v551_v14  ;;  %764 = vmatmul.bf16.vlgmr.msra.gmra.mxu3 %v552_v16  ;;  %v471_v6 = vunpack.c.0.s8 %v445_v61  ;;  %v458_v7 = vunpack.c.1.s8 %v1303_v62  ;;  %v472_v8 = vunpack.c.0.s8 %v446_v63  ;;  %v487_v11 = vcvt.s32.f32 %v455_v0 }
  0x92   : > { %695 = vmatmul.bf16.vlgmr.msra.gmra.mxu0 %v543_v13  ;;  %744 = vmatmul.bf16.vlgmr.msra.gmra.mxu1 %v544_v15  ;;  %v335_v24 = vpop.permute.xlu0 %334  ;;  %v505_v12 = vcvt.s32.f32 %v473_v1  ;;  %v350_v13 = vpop.permute.xlu2 %349  ;;  %v488_v16 = vcvt.s32.f32 %v456_v3  ;;  %v506_v17 = vcvt.s32.f32 %v474_v4  ;;  %v489_v20 = vcvt.s32.f32 %v457_v5 }
  0x93   : > { %v340_v25 = vpop.permute.xlu1 %339  ;;  %v411_v35 = vmul.f32 %v1266_v44, %v335_v24  ;;  %v412_v36 = vmul.f32 %v1268_v45, %v335_v24  ;;  %v417_v19 = vmul.f32 %v1266_v44, %v350_v13  ;;  %v503_v21 = vcvt.s32.f32 %v471_v6 }
  0x94   : > { %v413_v38 = vmul.f32 %v1266_v44, %v340_v25  ;;  %v414_v41 = vmul.f32 %v1268_v45, %v340_v25  ;;  %v418_v23 = vmul.f32 %v1268_v45, %v350_v13  ;;  %v490_v25 = vcvt.s32.f32 %v458_v7 }
  0x95   : > { %v515_v46 = vmul.f32 %v483_v32, %v411_v35  ;;  %v516_v50 = vmul.f32 %v484_v39, %v412_v36  ;;  %v504_v26 = vcvt.s32.f32 %v472_v8  ;;  %v521_v31 = vmul.f32 %v489_v20, %v417_v19 }
  0x96   : > { %v517_v47 = vmul.f32 %v485_v33, %v413_v38  ;;  %v518_v51 = vmul.f32 %v486_v40, %v414_v41  ;;  %v535_v32 = vmul.f32 %v503_v21, %v431_v18  ;;  %v522_v33 = vmul.f32 %v490_v25, %v418_v23 }
  0x97   : > { %v536_v34 = vmul.f32 %v504_v26, %v432_v22  ;;  %v477_v40 = vunpack.c.3.s8 %v445_v61  ;;  %v478_v36 = vunpack.c.3.s8 %v446_v63  ;;  %v475_v41 = vunpack.c.2.s8 %v445_v61 }
  0x98   : > { %v545_v55 = vpack.c.bf16 %v517_v47, %v515_v46  ;;  %v546_v58 = vpack.c.bf16 %v518_v51, %v516_v50  ;;  %v461_v43 = vunpack.c.3.s8 %v1299_v60  ;;  %v462_v48 = vunpack.c.3.s8 %v1303_v62 }
  0x99   : > { %v459_v49 = vunpack.c.2.s8 %v1299_v60  ;;  %v460_v50 = vunpack.c.2.s8 %v1303_v62  ;;  %v509_v52 = vcvt.s32.f32 %v477_v40  ;;  %v510_v53 = vcvt.s32.f32 %v478_v36 }
  0x9a   : > { %v390_v57 = vpop.permute.xlu0 %389  ;;  %v355_v51 = vpop.permute.xlu2 %354  ;;  %v507_v54 = vcvt.s32.f32 %v475_v41  ;;  %v494_v0 = vcvt.s32.f32 %v462_v48 }
  0x9b   : > { %v345_v2 = vpop.permute.xlu1 %344  ;;  %v433_v9 = vmul.f32 %v1266_v44, %v390_v57  ;;  %v434_v14 = vmul.f32 %v1268_v45, %v390_v57  ;;  %v419_v62 = vmul.f32 %v1266_v44, %v355_v51  ;;  %v491_v1 = vcvt.s32.f32 %v459_v49 }
  0x9c   : > { %v415_v10 = vmul.f32 %v1266_v44, %v345_v2  ;;  %v416_v15 = vmul.f32 %v1268_v45, %v345_v2  ;;  %v420_v2 = vmul.f32 %v1268_v45, %v355_v51  ;;  %v492_v3 = vcvt.s32.f32 %v460_v50 }
  0x9d   : > { %v537_v28 = vmul.f32 %v505_v12, %v433_v9  ;;  %v538_v30 = vmul.f32 %v506_v17, %v434_v14 }
  0x9e   : > { %v519_v27 = vmul.f32 %v487_v11, %v415_v10  ;;  %v520_v29 = vmul.f32 %v488_v16, %v416_v15  ;;  %v523_v10 = vmul.f32 %v491_v1, %v419_v62  ;;  %v524_v11 = vmul.f32 %v492_v3, %v420_v2 }
  0x9f   : > { %v555_v35 = vpack.c.bf16 %v537_v28, %v535_v32  ;;  %v556_v39 = vpack.c.bf16 %v538_v30, %v536_v34 }
  0xa0   : > { %v547_v37 = vpack.c.bf16 %v521_v31, %v519_v27  ;;  %v548_v38 = vpack.c.bf16 %v522_v33, %v520_v29 }
  0xa1   : > { %720 = vmatmul.bf16.gmra.mxu2 %v553_v56  ;;  %769 = vmatmul.bf16.gmra.mxu3 %v554_v59  ;;  %v493_v59 = vcvt.s32.f32 %v461_v43 }
  0xa2   : > { %700 = vmatmul.bf16.gmra.mxu0 %v545_v55  ;;  %749 = vmatmul.bf16.gmra.mxu1 %v546_v58  ;;  %v395_v24 = vpop.permute.xlu0 %394  ;;  %v508_v55 = vcvt.s32.f32 %v476_v42 }
  0xa3   : > { %v400_v46 = vpop.permute.xlu1 %399  ;;  %v435_v56 = vmul.f32 %v1266_v44, %v395_v24  ;;  %v436_v61 = vmul.f32 %v1268_v45, %v395_v24 }
  0xa4   : > { %v437_v57 = vmul.f32 %v1266_v44, %v400_v46  ;;  %v438_v63 = vmul.f32 %v1268_v45, %v400_v46 }
  0xa5   : > { %v539_v6 = vmul.f32 %v507_v54, %v435_v56  ;;  %v540_v9 = vmul.f32 %v508_v55, %v436_v61 }
  0xa6   : > { %v541_v4 = vmul.f32 %v509_v52, %v437_v57  ;;  %v542_v7 = vmul.f32 %v510_v53, %v438_v63 }
  0xa8   : > { %v557_v13 = vpack.c.bf16 %v541_v4, %v539_v6  ;;  %v558_v15 = vpack.c.bf16 %v542_v7, %v540_v9 }
  0xaa   : > { %v360_v47 = vpop.permute.xlu0 %359 }
  0xab   : > { %v421_v58 = vmul.f32 %v1266_v44, %v360_v47  ;;  %v422_v60 = vmul.f32 %v1268_v45, %v360_v47 }
  0xad   : > { %v525_v5 = vmul.f32 %v493_v59, %v421_v58  ;;  %v526_v8 = vmul.f32 %v494_v0, %v422_v60 }
  0xaf   : > { %v549_v12 = vpack.c.bf16 %v525_v5, %v523_v10  ;;  %v550_v14 = vpack.c.bf16 %v526_v8, %v524_v11 }
  0xb1   : > { %725 = vmatmul.bf16.gmra.mxu2 %v555_v35  ;;  %774 = vmatmul.bf16.gmra.mxu3 %v556_v39 }
  0xb2   : > { %705 = vmatmul.bf16.gmra.mxu0 %v547_v37  ;;  %754 = vmatmul.bf16.gmra.mxu1 %v548_v38 }
  0xc1   : > { %730 = vmatmul.bf16.gmra.mxu2 %v557_v13  ;;  %779 = vmatmul.bf16.gmra.mxu3 %v558_v15 }
  0xc2   : > { %710 = vmatmul.bf16.gmra.mxu0 %v549_v12  ;;  %759 = vmatmul.bf16.gmra.mxu1 %v550_v14 }
 0x10f   : > { %v696_v44 = vpop.f32.mrf.mxu0  ;;  %v745_v45 = vpop.f32.mrf.mxu1 }
 0x110   : > { %v746_v16 = vadd.f32 %v745_v45, %v696_v44 }
 0x112   : > { %v785_v17 = vmax.f32 %v746_v16, 0.0 }
 0x114   : > { %v801_v18 = vpack.c.bf16 %v785_v17, %v785_v17  ;;  %v716_v19 = vpop.f32.mrf.mxu2  ;;  %v765_v20 = vpop.f32.mrf.mxu3 }
 0x115   : > { %v766_v21 = vadd.f32 %v765_v20, %v716_v19 }
 0x116   : > { %818 = vst.msk [vmem:[%s1334_s23] sm:$0xf] %vm817_vm0, %v801_v18 }
 0x117   : > { %v698_v22 = vpop.f32.mrf.mxu0  ;;  %v747_v23 = vpop.f32.mrf.mxu1  ;;  %v793_v24 = vmax.f32 %v766_v21, 0.0 }
 0x118   : > { %v748_v25 = vadd.f32 %v747_v23, %v698_v22 }
 0x119   : > { %v809_v26 = vpack.c.bf16 %v793_v24, %v793_v24 }
 0x11a   : > { %v786_v27 = vmax.f32 %v748_v25, 0.0 }
 0x11b   : > { %826 = vst.msk [vmem:[%s1334_s23 + $0x20] sm:$0xf] %vm817_vm0, %v809_v26 }
 0x11c   : > { %v802_v28 = vpack.c.bf16 %v786_v27, %v786_v27  ;;  %v718_v29 = vpop.f32.mrf.mxu2  ;;  %v767_v30 = vpop.f32.mrf.mxu3 }
 0x11d   : > { %v768_v31 = vadd.f32 %v767_v30, %v718_v29 }
 0x11e   : > { %819 = vst.msk [vmem:[%s1334_s23 + $0x4] sm:$0xf] %vm817_vm0, %v802_v28 }
 0x11f   : > { %v701_v32 = vpop.f32.mrf.mxu0  ;;  %v750_v33 = vpop.f32.mrf.mxu1  ;;  %v794_v34 = vmax.f32 %v768_v31, 0.0 }
 0x120   : > { %v751_v37 = vadd.f32 %v750_v33, %v701_v32 }
 0x121   : > { %v810_v35 = vpack.c.bf16 %v794_v34, %v794_v34 }
 0x122   : > { %v787_v38 = vmax.f32 %v751_v37, 0.0 }
 0x123   : > { %827 = vst.msk [vmem:[%s1334_s23 + $0x24] sm:$0xf] %vm817_vm0, %v810_v35 }
 0x124   : > { %v803_v39 = vpack.c.bf16 %v787_v38, %v787_v38  ;;  %v721_v40 = vpop.f32.mrf.mxu2  ;;  %v770_v36 = vpop.f32.mrf.mxu3 }
 0x125   : > { %v771_v41 = vadd.f32 %v770_v36, %v721_v40 }
 0x126   : > { %820 = vst.msk [vmem:[%s1334_s23 + $0x8] sm:$0xf] %vm817_vm0, %v803_v39 }
 0x127   : > { %v703_v42 = vpop.f32.mrf.mxu0  ;;  %v752_v43 = vpop.f32.mrf.mxu1  ;;  %v795_v46 = vmax.f32 %v771_v41, 0.0 }
 0x128   : > { %v753_v47 = vadd.f32 %v752_v43, %v703_v42 }
 0x129   : > { %v811_v48 = vpack.c.bf16 %v795_v46, %v795_v46 }
 0x12a   : > { %v788_v49 = vmax.f32 %v753_v47, 0.0 }
 0x12b   : > { %828 = vst.msk [vmem:[%s1334_s23 + $0x28] sm:$0xf] %vm817_vm0, %v811_v48 }
 0x12c   : > { %v804_v50 = vpack.c.bf16 %v788_v49, %v788_v49  ;;  %v723_v51 = vpop.f32.mrf.mxu2  ;;  %v772_v52 = vpop.f32.mrf.mxu3 }
 0x12d   : > { %v773_v53 = vadd.f32 %v772_v52, %v723_v51 }
 0x12e   : > { %821 = vst.msk [vmem:[%s1334_s23 + $0xc] sm:$0xf] %vm817_vm0, %v804_v50 }
 0x12f   : > { %v706_v54 = vpop.f32.mrf.mxu0  ;;  %v755_v55 = vpop.f32.mrf.mxu1  ;;  %v796_v56 = vmax.f32 %v773_v53, 0.0 }
 0x130   : > { %v756_v57 = vadd.f32 %v755_v55, %v706_v54 }
 0x131   : > { %v812_v58 = vpack.c.bf16 %v796_v56, %v796_v56 }
 0x132   : > { %v789_v59 = vmax.f32 %v756_v57, 0.0 }
 0x133   : > { %829 = vst.msk [vmem:[%s1334_s23 + $0x2c] sm:$0xf] %vm817_vm0, %v812_v58 }
 0x134   : > { %v805_v61 = vpack.c.bf16 %v789_v59, %v789_v59  ;;  %v726_v63 = vpop.f32.mrf.mxu2  ;;  %v775_v60 = vpop.f32.mrf.mxu3 }
 0x135   : > { %v776_v0 = vadd.f32 %v775_v60, %v726_v63 }
 0x136   : > { %822 = vst.msk [vmem:[%s1334_s23 + $0x10] sm:$0xf] %vm817_vm0, %v805_v61 }
 0x137   : > { %v708_v62 = vpop.f32.mrf.mxu0  ;;  %v757_v1 = vpop.f32.mrf.mxu1  ;;  %v797_v2 = vmax.f32 %v776_v0, 0.0 }
 0x138   : > { %v758_v3 = vadd.f32 %v757_v1, %v708_v62 }
 0x139   : > { %v813_v4 = vpack.c.bf16 %v797_v2, %v797_v2 }
 0x13a   : > { %v790_v5 = vmax.f32 %v758_v3, 0.0 }
 0x13b   : > { %830 = vst.msk [vmem:[%s1334_s23 + $0x30] sm:$0xf] %vm817_vm0, %v813_v4 }
 0x13c   : > { %v806_v6 = vpack.c.bf16 %v790_v5, %v790_v5  ;;  %v728_v7 = vpop.f32.mrf.mxu2  ;;  %v777_v8 = vpop.f32.mrf.mxu3 }
 0x13d   : > { %v778_v9 = vadd.f32 %v777_v8, %v728_v7 }
 0x13e   : > { %823 = vst.msk [vmem:[%s1334_s23 + $0x14] sm:$0xf] %vm817_vm0, %v806_v6 }
 0x13f   : > { %v711_v10 = vpop.f32.mrf.mxu0  ;;  %v760_v11 = vpop.f32.mrf.mxu1  ;;  %v798_v12 = vmax.f32 %v778_v9, 0.0 }
 0x140   : > { %v761_v13 = vadd.f32 %v760_v11, %v711_v10 }
 0x141   : > { %v814_v14 = vpack.c.bf16 %v798_v12, %v798_v12 }
 0x142   : > { %v791_v15 = vmax.f32 %v761_v13, 0.0 }
 0x143   : > { %831 = vst.msk [vmem:[%s1334_s23 + $0x34] sm:$0xf] %vm817_vm0, %v814_v14 }
 0x144   : > { %v807_v44 = vpack.c.bf16 %v791_v15, %v791_v15  ;;  %v731_v45 = vpop.f32.mrf.mxu2  ;;  %v780_v16 = vpop.f32.mrf.mxu3 }
 0x145   : > { %v781_v17 = vadd.f32 %v780_v16, %v731_v45 }
 0x146   : > { %824 = vst.msk [vmem:[%s1334_s23 + $0x18] sm:$0xf] %vm817_vm0, %v807_v44 }
 0x147   : > { %v713_v18 = vpop.f32.mrf.mxu0  ;;  %v762_v19 = vpop.f32.mrf.mxu1  ;;  %v799_v20 = vmax.f32 %v781_v17, 0.0 }
 0x148   : > { %v763_v21 = vadd.f32 %v762_v19, %v713_v18 }
 0x149   : > { %v815_v22 = vpack.c.bf16 %v799_v20, %v799_v20 }
 0x14a   : > { %v792_v23 = vmax.f32 %v763_v21, 0.0 }
 0x14b   : > { %832 = vst.msk [vmem:[%s1334_s23 + $0x38] sm:$0xf] %vm817_vm0, %v815_v22 }
 0x14c   : > { %v808_v24 = vpack.c.bf16 %v792_v23, %v792_v23  ;;  %v733_v25 = vpop.f32.mrf.mxu2  ;;  %v782_v26 = vpop.f32.mrf.mxu3 }
 0x14d   : > { %v783_v27 = vadd.f32 %v782_v26, %v733_v25 }
 0x14e   : > { %825 = vst.msk [vmem:[%s1334_s23 + $0x1c] sm:$0xf] %vm817_vm0, %v808_v24 }
 0x14f   : > { %v800_v28 = vmax.f32 %v783_v27, 0.0 }
 0x151   : > { %v816_v29 = vpack.c.bf16 %v800_v28, %v800_v28 }
 0x153   : > { %833 = vst.msk [vmem:[%s1334_s23 + $0x3c] sm:$0xf] %vm817_vm0, %v816_v29 }
 0x154 PF: > { %s14_s17 = sadd.s32 1, %s1120_s17   ;;  %s1382_s15 = smov %s1116_s16 }
 0x155   : > { %p11_p6 = scmp.ge.s32.totalorder %s14_s17, 4   ;;  %s1383_s16 = smov %s1385_s18 }
 0x157   :  { %13 = sbr.rel (!%p11_p6) target bundleno = 2 (0x2), region = 75 }

// kernel: h2gcn_forward.7
= control target key start
LH: loop header
LB: loop body
LE: loop exit
PB: predicated region body
PF: predicated region fallthrough
CT: control target
= control target key end

     0   :  { %s1148_s15 = smov 0   ;;  %s1150_s16 = smov 0   ;;  %s1377_s0 = inlined_call_operand.vmem [shape: s8[256,256], index: 0, kind: input, shape index: {}]   ;;  %s1378_s1 = inlined_call_operand.vmem [shape: f32[256,1], index: 1, kind: input, shape index: {}]   ;;  %s1379_s2 = inlined_call_operand.vmem [shape: f32[1,256], index: 2, kind: input, shape index: {}]   ;;  %s1380_s3 = inlined_call_operand.vmem [shape: bf16[256,32], index: 3, kind: input, shape index: {}]   ;;  %s1381_s4 = inlined_call_operand.vmem [shape: bf16[256,32], index: 4, kind: output, shape index: {}]  }
   0x1   :  { %s1152_s17 = smov 0  }
   0x2 LB: > { %s33_s18 = sadd.s32 1, %s1116_s16  ;;  %p963_p0 = scmp.ge.s32.totalorder %s1120_s17, 1  ;;  %s1120_s17 = sphi %s1152_s17, %s14_s17   ;;  %s1116_s16 = sphi %s1150_s16, %s1383_s16   ;;  %s1112_s15 = sphi %s1148_s15, %s1382_s15  }
   0x3   : > { %p35_p1 = scmp.ge.s32.totalorder %s33_s18, 2  ;;  %p222_p2 = scmp.lt.s32.totalorder %s1120_s17, 3 }
   0x5   : > { %s1385_s18 = smov (%p35_p1, %s33_s18), 0  ;;  %p223_p3 = pnand %p963_p0, %p222_p2 }
   0x6   : > { %s967_s19 = sshll.u32 (!%p223_p3), %s1112_s15, 4  ;;  %s964_s9 = sshll.u32 (!%p223_p3), %s1112_s15, 2 }
   0x7   : > { %226 = sbr.rel (%p223_p3) target bundleno = 340 (0x154), region = 36  ;;  %p282_p4 = scmp.lt.s32.totalorder (!%p223_p3), %s967_s19, 31 }
   0x8   : > { %p271_p5 = scmp.lt.s32.totalorder (!%p223_p3), %s964_s9, 7 }
   0xc   : > { %v1122_v0 = vmov 0   ;;  %s1387_s19 = smov (!%p282_p4, %s967_s19), 31  ;;  %v1045_v7 = vld [vmem:[%s1380_s3 + $0x38] sm:$0xff]  ;;  %v1044_v19 = vld [vmem:[%s1380_s3 + $0x30] sm:$0xff]  ;;  %v1043_v21 = vld [vmem:[%s1380_s3 + $0x28] sm:$0xff]  ;;  %s1389_s9 = smov (!%p271_p5, %s964_s9), 7 }
   0xd   : > { %1096 = vset.pattern.permute.xlu1 %v1122_v0  ;;  %1095 = vset.pattern.permute.xlu0 %v1122_v0  ;;  %s968_s20 = sshll.u32 %s1387_s19, 3  ;;  %v1053_v8 = vld [vmem:[%s1380_s3 + $0x78] sm:$0xff]  ;;  %v1052_v20 = vld [vmem:[%s1380_s3 + $0x70] sm:$0xff]  ;;  %v1051_v22 = vld [vmem:[%s1380_s3 + $0x68] sm:$0xff]  ;;  %s1037_s10 = sshll.u32 %s1389_s9, 4  ;;  %vm817_vm0 = vcmask 257024  }
   0xe   : > { %1097 = vset.pattern.permute.xlu2 %v1122_v0  ;;  %s1175_s23 = scalar_lea.vmem %s1378_s1, %s968_s20  ;;  %687 = vmatpush.bf16.msra.mxu0 %v1045_v7  ;;  %v1042_v23 = vld [vmem:[%s1380_s3 + $0x20] sm:$0xff]  ;;  %v1041_v25 = vld [vmem:[%s1380_s3 + $0x18] sm:$0xff]  ;;  %v1040_v27 = vld [vmem:[%s1380_s3 + $0x10] sm:$0xff]  ;;  %s1245_s13 = scalar_lea.vmem %s1377_s0, %s1037_s10 }
   0xf   : > { %v313_v1 = vld [vmem:[%s1175_s23 + $0x40] sm:$0xff]  ;;  %v315_v3 = vld [vmem:[%s1175_s23 + $0x50] sm:$0xff]  ;;  %v314_v4 = vld [vmem:[%s1175_s23 + $0x48] sm:$0xff]  ;;  %1054 = vmatpush.bf16.msra.mxu2 %v1045_v7  ;;  %736 = vmatpush.bf16.msra.mxu1 %v1053_v8  ;;  %s970_s20 = sshll.u32 %s1387_s19, 2 }
  0x10   : > { %v305_v2 = vld [vmem:[%s1175_s23] sm:$0xff]  ;;  %364 = vperm.xlu0 %1095, %v313_v1   ;;  %374 = vperm.xlu2 %1097, %v315_v3   ;;  %v306_v5 = vld [vmem:[%s1175_s23 + $0x8] sm:$0xff]  ;;  %v316_v6 = vld [vmem:[%s1175_s23 + $0x58] sm:$0xff] }
  0x11   : > { %324 = vperm.xlu1 %1096, %v305_v2   ;;  %1062 = vmatpush.bf16.msra.mxu3 %v1053_v8  ;;  %v307_v9 = vld [vmem:[%s1175_s23 + $0x10] sm:$0xff]  ;;  %v308_v10 = vld [vmem:[%s1175_s23 + $0x18] sm:$0xff]  ;;  %v317_v11 = vld [vmem:[%s1175_s23 + $0x60] sm:$0xff] }
  0x12   : > { %v318_v12 = vld [vmem:[%s1175_s23 + $0x68] sm:$0xff]  ;;  %v309_v13 = vld [vmem:[%s1175_s23 + $0x20] sm:$0xff]  ;;  %v319_v15 = vld [vmem:[%s1175_s23 + $0x70] sm:$0xff]  ;;  %688 = vmatpush.bf16.msra.mxu0 %v1044_v19 }
  0x13   : > { %v310_v14 = vld [vmem:[%s1175_s23 + $0x28] sm:$0xff]  ;;  %v320_v16 = vld [vmem:[%s1175_s23 + $0x78] sm:$0xff]  ;;  %v311_v17 = vld [vmem:[%s1175_s23 + $0x30] sm:$0xff]  ;;  %1055 = vmatpush.bf16.msra.mxu2 %v1044_v19  ;;  %737 = vmatpush.bf16.msra.mxu1 %v1052_v20 }
  0x14   : > { %v312_v18 = vld [vmem:[%s1175_s23 + $0x38] sm:$0xff]  ;;  %v1050_v24 = vld [vmem:[%s1380_s3 + $0x60] sm:$0xff]  ;;  %v1048_v28 = vld [vmem:[%s1380_s3 + $0x50] sm:$0xff]  ;;  %s1334_s23 = scalar_lea.vmem %s1381_s4, %s970_s20 }
  0x15   : > { %1063 = vmatpush.bf16.msra.mxu3 %v1052_v20  ;;  %v1049_v26 = vld [vmem:[%s1380_s3 + $0x58] sm:$0xff]  ;;  %v1039_v29 = vld [vmem:[%s1380_s3 + $0x8] sm:$0xff]  ;;  %v1038_v31 = vld [vmem:[%s1380_s3] sm:$0xff] }
  0x16   : > { %689 = vmatpush.bf16.msra.mxu0 %v1043_v21  ;;  %v1047_v30 = vld [vmem:[%s1380_s3 + $0x48] sm:$0xff]  ;;  %v1046_v32 = vld [vmem:[%s1380_s3 + $0x40] sm:$0xff] }
  0x17   : > { %1056 = vmatpush.bf16.msra.mxu2 %v1043_v21  ;;  %738 = vmatpush.bf16.msra.mxu1 %v1051_v22  ;;  %v1248_v33 = vld [vmem:[%s1245_s13 + $0x20] sm:$0xff]  ;;  %v1254_v35 = vld [vmem:[%s1245_s13 + $0x8] sm:$0xff] }
  0x18   : > { %369 = vperm.xlu0 %1095, %v314_v4   ;;  %379 = vperm.xlu2 %1097, %v316_v6   ;;  %v1251_v34 = vld [vmem:[%s1245_s13] sm:$0xff]  ;;  %v1257_v36 = vld [vmem:[%s1245_s13 + $0x28] sm:$0xff]  ;;  %v463_v41 = vunpack.c.0.s8 %v1248_v33  ;;  %v448_v42 = vunpack.c.0.s8 %v1254_v35  ;;  %v465_v47 = vunpack.c.1.s8 %v1248_v33  ;;  %v450_v48 = vunpack.c.1.s8 %v1254_v35 }
  0x19   : > { %329 = vperm.xlu1 %1096, %v306_v5   ;;  %1064 = vmatpush.bf16.msra.mxu3 %v1051_v22  ;;  %v321_v37 = vld [vmem:[%s1379_s2] sm:$0x3]  ;;  %v447_v40 = vunpack.c.0.s8 %v1251_v34  ;;  %v464_v43 = vunpack.c.0.s8 %v1257_v36  ;;  %v449_v46 = vunpack.c.1.s8 %v1251_v34  ;;  %v466_v49 = vunpack.c.1.s8 %v1257_v36 }
  0x1a   : > { %690 = vmatpush.bf16.msra.mxu0 %v1042_v23  ;;  %v1266_v44 = vperm.slane %v321_v37, 0  ;;  %v1268_v45 = vperm.slane %v321_v37, 1  ;;  %v495_v51 = vcvt.s32.f32 %v463_v41  ;;  %v480_v52 = vcvt.s32.f32 %v448_v42 }
  0x1b   : > { %1057 = vmatpush.bf16.msra.mxu2 %v1042_v23  ;;  %739 = vmatpush.bf16.msra.mxu1 %v1050_v24  ;;  %v479_v50 = vcvt.s32.f32 %v447_v40  ;;  %v496_v53 = vcvt.s32.f32 %v464_v43  ;;  %v481_v59 = vcvt.s32.f32 %v449_v46  ;;  %v497_v60 = vcvt.s32.f32 %v465_v47 }
  0x1c   : > { %v482_v61 = vcvt.s32.f32 %v450_v48  ;;  %v498_v62 = vcvt.s32.f32 %v466_v49  ;;  %v467_v19 = vunpack.c.2.s8 %v1248_v33  ;;  %v469_v20 = vunpack.c.3.s8 %v1248_v33 }
  0x1d   : > { %1065 = vmatpush.bf16.msra.mxu3 %v1050_v24  ;;  %v452_v22 = vunpack.c.2.s8 %v1254_v35  ;;  %v454_v23 = vunpack.c.3.s8 %v1254_v35 }
  0x1e   : > { %691 = vmatpush.bf16.msra.mxu0 %v1041_v25  ;;  %v501_v37 = vcvt.s32.f32 %v469_v20 }
  0x1f   : > { %1058 = vmatpush.bf16.msra.mxu2 %v1041_v25  ;;  %740 = vmatpush.bf16.msra.mxu1 %v1049_v26  ;;  %v486_v40 = vcvt.s32.f32 %v454_v23 }
  0x20   : > { %334 = vperm.xlu0 %1095, %v307_v9   ;;  %384 = vperm.xlu2 %1097, %v317_v11  }
  0x21   : > { %339 = vperm.xlu1 %1096, %v308_v10   ;;  %1066 = vmatpush.bf16.msra.mxu3 %v1049_v26  ;;  %v468_v26 = vunpack.c.2.s8 %v1257_v36 }
  0x22   : > { %692 = vmatpush.bf16.msra.mxu0 %v1040_v27 }
  0x23   : > { %1059 = vmatpush.bf16.msra.mxu2 %v1040_v27  ;;  %741 = vmatpush.bf16.msra.mxu1 %v1048_v28  ;;  %v470_v27 = vunpack.c.3.s8 %v1257_v36  ;;  %v500_v42 = vcvt.s32.f32 %v468_v26 }
  0x25   : > { %1067 = vmatpush.bf16.msra.mxu3 %v1048_v28  ;;  %v502_v43 = vcvt.s32.f32 %v470_v27 }
  0x26   : > { %693 = vmatpush.bf16.msra.mxu0 %v1039_v29 }
  0x27   : > { %1060 = vmatpush.bf16.msra.mxu2 %v1039_v29  ;;  %742 = vmatpush.bf16.msra.mxu1 %v1047_v30 }
  0x28   : > { %389 = vperm.xlu0 %1095, %v318_v12   ;;  %349 = vperm.xlu2 %1097, %v310_v14  }
  0x29   : > { %344 = vperm.xlu1 %1096, %v309_v13   ;;  %1068 = vmatpush.bf16.msra.mxu3 %v1047_v30 }
  0x2a   : > { %694 = vmatpush.bf16.msra.mxu0 %v1038_v31 }
  0x2b   : > { %1061 = vmatpush.bf16.msra.mxu2 %v1038_v31  ;;  %743 = vmatpush.bf16.msra.mxu1 %v1046_v32 }
  0x2d   : > { %1069 = vmatpush.bf16.msra.mxu3 %v1046_v32 }
  0x30   : > { %394 = vperm.xlu0 %1095, %v319_v15   ;;  %354 = vperm.xlu2 %1097, %v311_v17   ;;  %v451_v17 = vunpack.c.2.s8 %v1251_v34 }
  0x31   : > { %399 = vperm.xlu1 %1096, %v320_v16  }
  0x32   : > { %v483_v32 = vcvt.s32.f32 %v451_v17 }
  0x38   : > { %359 = vperm.xlu0 %1095, %v312_v18   ;;  %v453_v18 = vunpack.c.3.s8 %v1251_v34  ;;  %v499_v34 = vcvt.s32.f32 %v467_v19 }
  0x3a   : > { %v485_v33 = vcvt.s32.f32 %v453_v18 }
  0x6a   : > { %v375_v58 = vpop.permute.xlu2 %374 }
  0x6b   : > { %v427_v28 = vmul.f32 %v1266_v44, %v375_v58  ;;  %v428_v29 = vmul.f32 %v1268_v45, %v375_v58 }
  0x6d   : > { %v531_v48 = vmul.f32 %v499_v34, %v427_v28 }
  0x72   : > { %v380_v21 = vpop.permute.xlu2 %379 }
  0x73   : > { %v429_v30 = vmul.f32 %v1266_v44, %v380_v21  ;;  %v430_v31 = vmul.f32 %v1268_v45, %v380_v21 }
  0x75   : > { %v533_v49 = vmul.f32 %v501_v37, %v429_v30 }
  0x82   : > { %v365_v38 = vpop.permute.xlu0 %364 }
  0x83   : > { %v325_v39 = vpop.permute.xlu1 %324  ;;  %v423_v54 = vmul.f32 %v1266_v44, %v365_v38  ;;  %v424_v55 = vmul.f32 %v1268_v45, %v365_v38 }
  0x84   : > { %v407_v56 = vmul.f32 %v1266_v44, %v325_v39  ;;  %v408_v57 = vmul.f32 %v1268_v45, %v325_v39  ;;  %v484_v39 = vcvt.s32.f32 %v452_v22 }
  0x85   : > { %v527_v6 = vmul.f32 %v495_v51, %v423_v54  ;;  %v528_v8 = vmul.f32 %v496_v53, %v424_v55  ;;  %v534_v53 = vmul.f32 %v502_v43, %v430_v31  ;;  %v385_v54 = vpop.permute.xlu2 %384 }
  0x86   : > { %v511_v5 = vmul.f32 %v479_v50, %v407_v56  ;;  %v512_v7 = vmul.f32 %v480_v52, %v408_v57  ;;  %v532_v52 = vmul.f32 %v500_v42, %v428_v29  ;;  %v553_v56 = vpack.c.bf16 %v533_v49, %v531_v48 }
  0x87   : > { %v431_v18 = vmul.f32 %v1266_v44, %v385_v54  ;;  %v432_v22 = vmul.f32 %v1268_v45, %v385_v54 }
  0x8a   : > { %v370_v63 = vpop.permute.xlu0 %369 }
  0x8b   : > { %v330_v0 = vpop.permute.xlu1 %329  ;;  %v425_v1 = vmul.f32 %v1266_v44, %v370_v63  ;;  %v426_v2 = vmul.f32 %v1268_v45, %v370_v63  ;;  %v446_v63 = vld [vmem:[%s1245_s13 + $0x38] sm:$0xff] }
  0x8c   : > { %v409_v3 = vmul.f32 %v1266_v44, %v330_v0  ;;  %v410_v4 = vmul.f32 %v1268_v45, %v330_v0  ;;  %v476_v42 = vunpack.c.2.s8 %v446_v63 }
  0x8d   : > { %v529_v10 = vmul.f32 %v497_v60, %v425_v1  ;;  %v530_v12 = vmul.f32 %v498_v62, %v426_v2  ;;  %v1299_v60 = vld [vmem:[%s1245_s13 + $0x10] sm:$0xff]  ;;  %v1303_v62 = vld [vmem:[%s1245_s13 + $0x18] sm:$0xff] }
  0x8e   : > { %v513_v9 = vmul.f32 %v481_v59, %v409_v3  ;;  %v514_v11 = vmul.f32 %v482_v61, %v410_v4  ;;  %v554_v59 = vpack.c.bf16 %v534_v53, %v532_v52  ;;  %v445_v61 = vld [vmem:[%s1245_s13 + $0x30] sm:$0xff]  ;;  %v455_v0 = vunpack.c.0.s8 %v1299_v60 }
  0x8f   : > { %v551_v14 = vpack.c.bf16 %v529_v10, %v527_v6  ;;  %v552_v16 = vpack.c.bf16 %v530_v12, %v528_v8  ;;  %v473_v1 = vunpack.c.1.s8 %v445_v61  ;;  %v456_v3 = vunpack.c.0.s8 %v1303_v62 }
  0x90   : > { %v543_v13 = vpack.c.bf16 %v513_v9, %v511_v5  ;;  %v544_v15 = vpack.c.bf16 %v514_v11, %v512_v7  ;;  %v474_v4 = vunpack.c.1.s8 %v446_v63  ;;  %v457_v5 = vunpack.c.1.s8 %v1299_v60 }
  0x91   : > { %715 = vmatmul.bf16.vlgmr.msra.gmra.mxu2 %v551_v14  ;;  %764 = vmatmul.bf16.vlgmr.msra.gmra.mxu3 %v552_v16  ;;  %v471_v6 = vunpack.c.0.s8 %v445_v61  ;;  %v458_v7 = vunpack.c.1.s8 %v1303_v62  ;;  %v472_v8 = vunpack.c.0.s8 %v446_v63  ;;  %v487_v11 = vcvt.s32.f32 %v455_v0 }
  0x92   : > { %695 = vmatmul.bf16.vlgmr.msra.gmra.mxu0 %v543_v13  ;;  %744 = vmatmul.bf16.vlgmr.msra.gmra.mxu1 %v544_v15  ;;  %v335_v24 = vpop.permute.xlu0 %334  ;;  %v505_v12 = vcvt.s32.f32 %v473_v1  ;;  %v350_v13 = vpop.permute.xlu2 %349  ;;  %v488_v16 = vcvt.s32.f32 %v456_v3  ;;  %v506_v17 = vcvt.s32.f32 %v474_v4  ;;  %v489_v20 = vcvt.s32.f32 %v457_v5 }
  0x93   : > { %v340_v25 = vpop.permute.xlu1 %339  ;;  %v411_v35 = vmul.f32 %v1266_v44, %v335_v24  ;;  %v412_v36 = vmul.f32 %v1268_v45, %v335_v24  ;;  %v417_v19 = vmul.f32 %v1266_v44, %v350_v13  ;;  %v503_v21 = vcvt.s32.f32 %v471_v6 }
  0x94   : > { %v413_v38 = vmul.f32 %v1266_v44, %v340_v25  ;;  %v414_v41 = vmul.f32 %v1268_v45, %v340_v25  ;;  %v418_v23 = vmul.f32 %v1268_v45, %v350_v13  ;;  %v490_v25 = vcvt.s32.f32 %v458_v7 }
  0x95   : > { %v515_v46 = vmul.f32 %v483_v32, %v411_v35  ;;  %v516_v50 = vmul.f32 %v484_v39, %v412_v36  ;;  %v504_v26 = vcvt.s32.f32 %v472_v8  ;;  %v521_v31 = vmul.f32 %v489_v20, %v417_v19 }
  0x96   : > { %v517_v47 = vmul.f32 %v485_v33, %v413_v38  ;;  %v518_v51 = vmul.f32 %v486_v40, %v414_v41  ;;  %v535_v32 = vmul.f32 %v503_v21, %v431_v18  ;;  %v522_v33 = vmul.f32 %v490_v25, %v418_v23 }
  0x97   : > { %v536_v34 = vmul.f32 %v504_v26, %v432_v22  ;;  %v477_v40 = vunpack.c.3.s8 %v445_v61  ;;  %v478_v36 = vunpack.c.3.s8 %v446_v63  ;;  %v475_v41 = vunpack.c.2.s8 %v445_v61 }
  0x98   : > { %v545_v55 = vpack.c.bf16 %v517_v47, %v515_v46  ;;  %v546_v58 = vpack.c.bf16 %v518_v51, %v516_v50  ;;  %v461_v43 = vunpack.c.3.s8 %v1299_v60  ;;  %v462_v48 = vunpack.c.3.s8 %v1303_v62 }
  0x99   : > { %v459_v49 = vunpack.c.2.s8 %v1299_v60  ;;  %v460_v50 = vunpack.c.2.s8 %v1303_v62  ;;  %v509_v52 = vcvt.s32.f32 %v477_v40  ;;  %v510_v53 = vcvt.s32.f32 %v478_v36 }
  0x9a   : > { %v390_v57 = vpop.permute.xlu0 %389  ;;  %v355_v51 = vpop.permute.xlu2 %354  ;;  %v507_v54 = vcvt.s32.f32 %v475_v41  ;;  %v494_v0 = vcvt.s32.f32 %v462_v48 }
  0x9b   : > { %v345_v2 = vpop.permute.xlu1 %344  ;;  %v433_v9 = vmul.f32 %v1266_v44, %v390_v57  ;;  %v434_v14 = vmul.f32 %v1268_v45, %v390_v57  ;;  %v419_v62 = vmul.f32 %v1266_v44, %v355_v51  ;;  %v491_v1 = vcvt.s32.f32 %v459_v49 }
  0x9c   : > { %v415_v10 = vmul.f32 %v1266_v44, %v345_v2  ;;  %v416_v15 = vmul.f32 %v1268_v45, %v345_v2  ;;  %v420_v2 = vmul.f32 %v1268_v45, %v355_v51  ;;  %v492_v3 = vcvt.s32.f32 %v460_v50 }
  0x9d   : > { %v537_v28 = vmul.f32 %v505_v12, %v433_v9  ;;  %v538_v30 = vmul.f32 %v506_v17, %v434_v14 }
  0x9e   : > { %v519_v27 = vmul.f32 %v487_v11, %v415_v10  ;;  %v520_v29 = vmul.f32 %v488_v16, %v416_v15  ;;  %v523_v10 = vmul.f32 %v491_v1, %v419_v62  ;;  %v524_v11 = vmul.f32 %v492_v3, %v420_v2 }
  0x9f   : > { %v555_v35 = vpack.c.bf16 %v537_v28, %v535_v32  ;;  %v556_v39 = vpack.c.bf16 %v538_v30, %v536_v34 }
  0xa0   : > { %v547_v37 = vpack.c.bf16 %v521_v31, %v519_v27  ;;  %v548_v38 = vpack.c.bf16 %v522_v33, %v520_v29 }
  0xa1   : > { %720 = vmatmul.bf16.gmra.mxu2 %v553_v56  ;;  %769 = vmatmul.bf16.gmra.mxu3 %v554_v59  ;;  %v493_v59 = vcvt.s32.f32 %v461_v43 }
  0xa2   : > { %700 = vmatmul.bf16.gmra.mxu0 %v545_v55  ;;  %749 = vmatmul.bf16.gmra.mxu1 %v546_v58  ;;  %v395_v24 = vpop.permute.xlu0 %394  ;;  %v508_v55 = vcvt.s32.f32 %v476_v42 }
  0xa3   : > { %v400_v46 = vpop.permute.xlu1 %399  ;;  %v435_v56 = vmul.f32 %v1266_v44, %v395_v24  ;;  %v436_v61 = vmul.f32 %v1268_v45, %v395_v24 }
  0xa4   : > { %v437_v57 = vmul.f32 %v1266_v44, %v400_v46  ;;  %v438_v63 = vmul.f32 %v1268_v45, %v400_v46 }
  0xa5   : > { %v539_v6 = vmul.f32 %v507_v54, %v435_v56  ;;  %v540_v9 = vmul.f32 %v508_v55, %v436_v61 }
  0xa6   : > { %v541_v4 = vmul.f32 %v509_v52, %v437_v57  ;;  %v542_v7 = vmul.f32 %v510_v53, %v438_v63 }
  0xa8   : > { %v557_v13 = vpack.c.bf16 %v541_v4, %v539_v6  ;;  %v558_v15 = vpack.c.bf16 %v542_v7, %v540_v9 }
  0xaa   : > { %v360_v47 = vpop.permute.xlu0 %359 }
  0xab   : > { %v421_v58 = vmul.f32 %v1266_v44, %v360_v47  ;;  %v422_v60 = vmul.f32 %v1268_v45, %v360_v47 }
  0xad   : > { %v525_v5 = vmul.f32 %v493_v59, %v421_v58  ;;  %v526_v8 = vmul.f32 %v494_v0, %v422_v60 }
  0xaf   : > { %v549_v12 = vpack.c.bf16 %v525_v5, %v523_v10  ;;  %v550_v14 = vpack.c.bf16 %v526_v8, %v524_v11 }
  0xb1   : > { %725 = vmatmul.bf16.gmra.mxu2 %v555_v35  ;;  %774 = vmatmul.bf16.gmra.mxu3 %v556_v39 }
  0xb2   : > { %705 = vmatmul.bf16.gmra.mxu0 %v547_v37  ;;  %754 = vmatmul.bf16.gmra.mxu1 %v548_v38 }
  0xc1   : > { %730 = vmatmul.bf16.gmra.mxu2 %v557_v13  ;;  %779 = vmatmul.bf16.gmra.mxu3 %v558_v15 }
  0xc2   : > { %710 = vmatmul.bf16.gmra.mxu0 %v549_v12  ;;  %759 = vmatmul.bf16.gmra.mxu1 %v550_v14 }
 0x10f   : > { %v696_v44 = vpop.f32.mrf.mxu0  ;;  %v745_v45 = vpop.f32.mrf.mxu1 }
 0x110   : > { %v746_v16 = vadd.f32 %v745_v45, %v696_v44 }
 0x112   : > { %v785_v17 = vmax.f32 %v746_v16, 0.0 }
 0x114   : > { %v801_v18 = vpack.c.bf16 %v785_v17, %v785_v17  ;;  %v716_v19 = vpop.f32.mrf.mxu2  ;;  %v765_v20 = vpop.f32.mrf.mxu3 }
 0x115   : > { %v766_v21 = vadd.f32 %v765_v20, %v716_v19 }
 0x116   : > { %818 = vst.msk [vmem:[%s1334_s23] sm:$0xf] %vm817_vm0, %v801_v18 }
 0x117   : > { %v698_v22 = vpop.f32.mrf.mxu0  ;;  %v747_v23 = vpop.f32.mrf.mxu1  ;;  %v793_v24 = vmax.f32 %v766_v21, 0.0 }
 0x118   : > { %v748_v25 = vadd.f32 %v747_v23, %v698_v22 }
 0x119   : > { %v809_v26 = vpack.c.bf16 %v793_v24, %v793_v24 }
 0x11a   : > { %v786_v27 = vmax.f32 %v748_v25, 0.0 }
 0x11b   : > { %826 = vst.msk [vmem:[%s1334_s23 + $0x20] sm:$0xf] %vm817_vm0, %v809_v26 }
 0x11c   : > { %v802_v28 = vpack.c.bf16 %v786_v27, %v786_v27  ;;  %v718_v29 = vpop.f32.mrf.mxu2  ;;  %v767_v30 = vpop.f32.mrf.mxu3 }
 0x11d   : > { %v768_v31 = vadd.f32 %v767_v30, %v718_v29 }
 0x11e   : > { %819 = vst.msk [vmem:[%s1334_s23 + $0x4] sm:$0xf] %vm817_vm0, %v802_v28 }
 0x11f   : > { %v701_v32 = vpop.f32.mrf.mxu0  ;;  %v750_v33 = vpop.f32.mrf.mxu1  ;;  %v794_v34 = vmax.f32 %v768_v31, 0.0 }
 0x120   : > { %v751_v37 = vadd.f32 %v750_v33, %v701_v32 }
 0x121   : > { %v810_v35 = vpack.c.bf16 %v794_v34, %v794_v34 }
 0x122   : > { %v787_v38 = vmax.f32 %v751_v37, 0.0 }
 0x123   : > { %827 = vst.msk [vmem:[%s1334_s23 + $0x24] sm:$0xf] %vm817_vm0, %v810_v35 }
 0x124   : > { %v803_v39 = vpack.c.bf16 %v787_v38, %v787_v38  ;;  %v721_v40 = vpop.f32.mrf.mxu2  ;;  %v770_v36 = vpop.f32.mrf.mxu3 }
 0x125   : > { %v771_v41 = vadd.f32 %v770_v36, %v721_v40 }
 0x126   : > { %820 = vst.msk [vmem:[%s1334_s23 + $0x8] sm:$0xf] %vm817_vm0, %v803_v39 }
 0x127   : > { %v703_v42 = vpop.f32.mrf.mxu0  ;;  %v752_v43 = vpop.f32.mrf.mxu1  ;;  %v795_v46 = vmax.f32 %v771_v41, 0.0 }
 0x128   : > { %v753_v47 = vadd.f32 %v752_v43, %v703_v42 }
 0x129   : > { %v811_v48 = vpack.c.bf16 %v795_v46, %v795_v46 }
 0x12a   : > { %v788_v49 = vmax.f32 %v753_v47, 0.0 }
 0x12b   : > { %828 = vst.msk [vmem:[%s1334_s23 + $0x28] sm:$0xf] %vm817_vm0, %v811_v48 }
 0x12c   : > { %v804_v50 = vpack.c.bf16 %v788_v49, %v788_v49  ;;  %v723_v51 = vpop.f32.mrf.mxu2  ;;  %v772_v52 = vpop.f32.mrf.mxu3 }
 0x12d   : > { %v773_v53 = vadd.f32 %v772_v52, %v723_v51 }
 0x12e   : > { %821 = vst.msk [vmem:[%s1334_s23 + $0xc] sm:$0xf] %vm817_vm0, %v804_v50 }
 0x12f   : > { %v706_v54 = vpop.f32.mrf.mxu0  ;;  %v755_v55 = vpop.f32.mrf.mxu1  ;;  %v796_v56 = vmax.f32 %v773_v53, 0.0 }
 0x130   : > { %v756_v57 = vadd.f32 %v755_v55, %v706_v54 }
 0x131   : > { %v812_v58 = vpack.c.bf16 %v796_v56, %v796_v56 }
 0x132   : > { %v789_v59 = vmax.f32 %v756_v57, 0.0 }
 0x133   : > { %829 = vst.msk [vmem:[%s1334_s23 + $0x2c] sm:$0xf] %vm817_vm0, %v812_v58 }
 0x134   : > { %v805_v61 = vpack.c.bf16 %v789_v59, %v789_v59  ;;  %v726_v63 = vpop.f32.mrf.mxu2  ;;  %v775_v60 = vpop.f32.mrf.mxu3 }
 0x135   : > { %v776_v0 = vadd.f32 %v775_v60, %v726_v63 }
 0x136   : > { %822 = vst.msk [vmem:[%s1334_s23 + $0x10] sm:$0xf] %vm817_vm0, %v805_v61 }
 0x137   : > { %v708_v62 = vpop.f32.mrf.mxu0  ;;  %v757_v1 = vpop.f32.mrf.mxu1  ;;  %v797_v2 = vmax.f32 %v776_v0, 0.0 }
 0x138   : > { %v758_v3 = vadd.f32 %v757_v1, %v708_v62 }
 0x139   : > { %v813_v4 = vpack.c.bf16 %v797_v2, %v797_v2 }
 0x13a   : > { %v790_v5 = vmax.f32 %v758_v3, 0.0 }
 0x13b   : > { %830 = vst.msk [vmem:[%s1334_s23 + $0x30] sm:$0xf] %vm817_vm0, %v813_v4 }
 0x13c   : > { %v806_v6 = vpack.c.bf16 %v790_v5, %v790_v5  ;;  %v728_v7 = vpop.f32.mrf.mxu2  ;;  %v777_v8 = vpop.f32.mrf.mxu3 }
 0x13d   : > { %v778_v9 = vadd.f32 %v777_v8, %v728_v7 }
 0x13e   : > { %823 = vst.msk [vmem:[%s1334_s23 + $0x14] sm:$0xf] %vm817_vm0, %v806_v6 }
 0x13f   : > { %v711_v10 = vpop.f32.mrf.mxu0  ;;  %v760_v11 = vpop.f32.mrf.mxu1  ;;  %v798_v12 = vmax.f32 %v778_v9, 0.0 }
 0x140   : > { %v761_v13 = vadd.f32 %v760_v11, %v711_v10 }
 0x141   : > { %v814_v14 = vpack.c.bf16 %v798_v12, %v798_v12 }
 0x142   : > { %v791_v15 = vmax.f32 %v761_v13, 0.0 }
 0x143   : > { %831 = vst.msk [vmem:[%s1334_s23 + $0x34] sm:$0xf] %vm817_vm0, %v814_v14 }
 0x144   : > { %v807_v44 = vpack.c.bf16 %v791_v15, %v791_v15  ;;  %v731_v45 = vpop.f32.mrf.mxu2  ;;  %v780_v16 = vpop.f32.mrf.mxu3 }
 0x145   : > { %v781_v17 = vadd.f32 %v780_v16, %v731_v45 }
 0x146   : > { %824 = vst.msk [vmem:[%s1334_s23 + $0x18] sm:$0xf] %vm817_vm0, %v807_v44 }
 0x147   : > { %v713_v18 = vpop.f32.mrf.mxu0  ;;  %v762_v19 = vpop.f32.mrf.mxu1  ;;  %v799_v20 = vmax.f32 %v781_v17, 0.0 }
 0x148   : > { %v763_v21 = vadd.f32 %v762_v19, %v713_v18 }
 0x149   : > { %v815_v22 = vpack.c.bf16 %v799_v20, %v799_v20 }
 0x14a   : > { %v792_v23 = vmax.f32 %v763_v21, 0.0 }
 0x14b   : > { %832 = vst.msk [vmem:[%s1334_s23 + $0x38] sm:$0xf] %vm817_vm0, %v815_v22 }
 0x14c   : > { %v808_v24 = vpack.c.bf16 %v792_v23, %v792_v23  ;;  %v733_v25 = vpop.f32.mrf.mxu2  ;;  %v782_v26 = vpop.f32.mrf.mxu3 }
 0x14d   : > { %v783_v27 = vadd.f32 %v782_v26, %v733_v25 }
 0x14e   : > { %825 = vst.msk [vmem:[%s1334_s23 + $0x1c] sm:$0xf] %vm817_vm0, %v808_v24 }
 0x14f   : > { %v800_v28 = vmax.f32 %v783_v27, 0.0 }
 0x151   : > { %v816_v29 = vpack.c.bf16 %v800_v28, %v800_v28 }
 0x153   : > { %833 = vst.msk [vmem:[%s1334_s23 + $0x3c] sm:$0xf] %vm817_vm0, %v816_v29 }
 0x154 PF: > { %s14_s17 = sadd.s32 1, %s1120_s17   ;;  %s1382_s15 = smov %s1116_s16 }
 0x155   : > { %p11_p6 = scmp.ge.s32.totalorder %s14_s17, 4   ;;  %s1383_s16 = smov %s1385_s18 }
 0x157   :  { %13 = sbr.rel (!%p11_p6) target bundleno = 2 (0x2), region = 75 }

// kernel: h2gcn_forward.6
= control target key start
LH: loop header
LB: loop body
LE: loop exit
PB: predicated region body
PF: predicated region fallthrough
CT: control target
= control target key end

     0   :  { %s703_s9 = smov 0   ;;  %s705_s10 = smov 0   ;;  %s804_s0 = inlined_call_operand.vmem [shape: bf16[256,128], index: 0, kind: input, shape index: {}]   ;;  %s805_s1 = inlined_call_operand.vmem [shape: bf16[128,32], index: 1, kind: input, shape index: {}]   ;;  %s806_s2 = inlined_call_operand.vmem [shape: bf16[256,32], index: 2, kind: output, shape index: {}]  }
   0x1   :  { %s707_s11 = smov 0  }
   0x2 LB: > { %s31_s12 = sadd.s32 1, %s682_s10  ;;  %p529_p0 = scmp.ge.s32.totalorder %s686_s11, 1  ;;  %s686_s11 = sphi %s707_s11, %s12_s11   ;;  %s682_s10 = sphi %s705_s10, %s808_s10   ;;  %s678_s9 = sphi %s703_s9, %s807_s9  }
   0x3   : > { %p33_p1 = scmp.ge.s32.totalorder %s31_s12, 2  ;;  %p148_p2 = scmp.lt.s32.totalorder %s686_s11, 3 }
   0x5   : > { %s810_s12 = smov (%p33_p1, %s31_s12), 0  ;;  %p149_p3 = pnand %p529_p0, %p148_p2 }
   0x6   : > { %s530_s21 = sshll.u32 (!%p149_p3), %s678_s9, 4 }
   0x7   : > { %152 = sbr.rel (%p149_p3) target bundleno = 207 (0xcf), region = 28  ;;  %p181_p4 = scmp.lt.s32.totalorder (!%p149_p3), %s530_s21, 31 }
   0xc   : > { %v615_v0 = vld [vmem:[%s805_s1 + $0x38] sm:$0xff]  ;;  %v614_v1 = vld [vmem:[%s805_s1 + $0x30] sm:$0xff]  ;;  %v613_v2 = vld [vmem:[%s805_s1 + $0x28] sm:$0xff]  ;;  %s812_s21 = smov (!%p181_p4, %s530_s21), 31  ;;  %vm411_vm0 = vcmask 257024  }
   0xd   : > { %330 = vmatpush.bf16.msra.mxu0 %v615_v0  ;;  %616 = vmatpush.bf16.msra.mxu1 %v615_v0  ;;  %v612_v3 = vld [vmem:[%s805_s1 + $0x20] sm:$0xff]  ;;  %v611_v4 = vld [vmem:[%s805_s1 + $0x18] sm:$0xff]  ;;  %v610_v5 = vld [vmem:[%s805_s1 + $0x10] sm:$0xff]  ;;  %s531_s28 = sshll.u32 %s812_s21, 2 }
   0xe   : > { %617 = vmatpush.bf16.msra.mxu2 %v615_v0  ;;  %618 = vmatpush.bf16.msra.mxu3 %v615_v0  ;;  %v609_v6 = vld [vmem:[%s805_s1 + $0x8] sm:$0xff]  ;;  %v608_v7 = vld [vmem:[%s805_s1] sm:$0xff]  ;;  %s187_s5 = scalar_lea.vmem %s804_s0, %s531_s28  ;;  %s761_s8 = scalar_lea.vmem %s806_s2, %s531_s28 }
   0xf   : > { %v600_v8 = vld [vmem:[%s187_s5] sm:$0xff]  ;;  %v602_v9 = vld [vmem:[%s187_s5 + $0x10] sm:$0xff]  ;;  %v601_v12 = vld [vmem:[%s187_s5 + $0x8] sm:$0xff] }
  0x10   : > { %v604_v10 = vld [vmem:[%s187_s5 + $0x20] sm:$0xff]  ;;  %v606_v11 = vld [vmem:[%s187_s5 + $0x30] sm:$0xff]  ;;  %v603_v13 = vld [vmem:[%s187_s5 + $0x18] sm:$0xff] }
  0x11   : > { %331 = vmatpush.bf16.msra.mxu0 %v614_v1  ;;  %619 = vmatpush.bf16.msra.mxu1 %v614_v1  ;;  %v605_v14 = vld [vmem:[%s187_s5 + $0x28] sm:$0xff]  ;;  %v607_v15 = vld [vmem:[%s187_s5 + $0x38] sm:$0xff] }
  0x12   : > { %620 = vmatpush.bf16.msra.mxu2 %v614_v1  ;;  %621 = vmatpush.bf16.msra.mxu3 %v614_v1 }
  0x15   : > { %332 = vmatpush.bf16.msra.mxu0 %v613_v2  ;;  %622 = vmatpush.bf16.msra.mxu1 %v613_v2 }
  0x16   : > { %623 = vmatpush.bf16.msra.mxu2 %v613_v2  ;;  %624 = vmatpush.bf16.msra.mxu3 %v613_v2 }
  0x19   : > { %333 = vmatpush.bf16.msra.mxu0 %v612_v3  ;;  %625 = vmatpush.bf16.msra.mxu1 %v612_v3 }
  0x1a   : > { %626 = vmatpush.bf16.msra.mxu2 %v612_v3  ;;  %627 = vmatpush.bf16.msra.mxu3 %v612_v3 }
  0x1d   : > { %334 = vmatpush.bf16.msra.mxu0 %v611_v4  ;;  %628 = vmatpush.bf16.msra.mxu1 %v611_v4 }
  0x1e   : > { %629 = vmatpush.bf16.msra.mxu2 %v611_v4  ;;  %630 = vmatpush.bf16.msra.mxu3 %v611_v4 }
  0x21   : > { %335 = vmatpush.bf16.msra.mxu0 %v610_v5  ;;  %631 = vmatpush.bf16.msra.mxu1 %v610_v5 }
  0x22   : > { %632 = vmatpush.bf16.msra.mxu2 %v610_v5  ;;  %633 = vmatpush.bf16.msra.mxu3 %v610_v5 }
  0x25   : > { %336 = vmatpush.bf16.msra.mxu0 %v609_v6  ;;  %634 = vmatpush.bf16.msra.mxu1 %v609_v6 }
  0x26   : > { %635 = vmatpush.bf16.msra.mxu2 %v609_v6  ;;  %636 = vmatpush.bf16.msra.mxu3 %v609_v6 }
  0x29   : > { %337 = vmatpush.bf16.msra.mxu0 %v608_v7  ;;  %637 = vmatpush.bf16.msra.mxu1 %v608_v7 }
  0x2a   : > { %638 = vmatpush.bf16.msra.mxu2 %v608_v7  ;;  %639 = vmatpush.bf16.msra.mxu3 %v608_v7 }
  0x2c   : > { %338 = vmatmul.bf16.vlgmr.msra.gmra.mxu0 %v600_v8  ;;  %348 = vmatmul.bf16.vlgmr.msra.gmra.mxu1 %v602_v9 }
  0x2d   : > { %358 = vmatmul.bf16.vlgmr.msra.gmra.mxu2 %v604_v10  ;;  %368 = vmatmul.bf16.vlgmr.msra.gmra.mxu3 %v606_v11 }
  0x3c   : > { %343 = vmatmul.bf16.gmra.mxu0 %v601_v12  ;;  %353 = vmatmul.bf16.gmra.mxu1 %v603_v13 }
  0x3d   : > { %363 = vmatmul.bf16.gmra.mxu2 %v605_v14  ;;  %373 = vmatmul.bf16.gmra.mxu3 %v607_v15 }
  0xa9   : > { %v339_v16 = vpop.f32.mrf.mxu0  ;;  %v349_v17 = vpop.f32.mrf.mxu1 }
  0xaa   : > { %v379_v18 = vmax.f32 %v339_v16, 0.0  ;;  %v383_v19 = vmax.f32 %v349_v17, 0.0 }
  0xac   : > { %v395_v20 = vpack.c.bf16 %v379_v18, %v379_v18  ;;  %v399_v21 = vpack.c.bf16 %v383_v19, %v383_v19 }
  0xae   : > { %412 = vst.msk [vmem:[%s761_s8] sm:$0xf] %vm411_vm0, %v395_v20 }
  0xaf   : > { %416 = vst.msk [vmem:[%s761_s8 + $0x10] sm:$0xf] %vm411_vm0, %v399_v21 }
  0xb0   : > { %v359_v22 = vpop.f32.mrf.mxu2  ;;  %v369_v23 = vpop.f32.mrf.mxu3 }
  0xb1   : > { %v387_v24 = vmax.f32 %v359_v22, 0.0  ;;  %v391_v25 = vmax.f32 %v369_v23, 0.0  ;;  %v341_v26 = vpop.f32.mrf.mxu0  ;;  %v351_v27 = vpop.f32.mrf.mxu1 }
  0xb2   : > { %v380_v28 = vmax.f32 %v341_v26, 0.0  ;;  %v384_v29 = vmax.f32 %v351_v27, 0.0 }
  0xb3   : > { %v403_v30 = vpack.c.bf16 %v387_v24, %v387_v24  ;;  %v407_v31 = vpack.c.bf16 %v391_v25, %v391_v25 }
  0xb4   : > { %v396_v32 = vpack.c.bf16 %v380_v28, %v380_v28  ;;  %v400_v33 = vpack.c.bf16 %v384_v29, %v384_v29 }
  0xb5   : > { %420 = vst.msk [vmem:[%s761_s8 + $0x20] sm:$0xf] %vm411_vm0, %v403_v30 }
  0xb6   : > { %424 = vst.msk [vmem:[%s761_s8 + $0x30] sm:$0xf] %vm411_vm0, %v407_v31 }
  0xb7   : > { %413 = vst.msk [vmem:[%s761_s8 + $0x4] sm:$0xf] %vm411_vm0, %v396_v32 }
  0xb8   : > { %417 = vst.msk [vmem:[%s761_s8 + $0x14] sm:$0xf] %vm411_vm0, %v400_v33  ;;  %v361_v34 = vpop.f32.mrf.mxu2  ;;  %v371_v35 = vpop.f32.mrf.mxu3 }
  0xb9   : > { %v388_v36 = vmax.f32 %v361_v34, 0.0  ;;  %v392_v37 = vmax.f32 %v371_v35, 0.0  ;;  %v344_v38 = vpop.f32.mrf.mxu0  ;;  %v354_v39 = vpop.f32.mrf.mxu1 }
  0xba   : > { %v381_v40 = vmax.f32 %v344_v38, 0.0  ;;  %v385_v41 = vmax.f32 %v354_v39, 0.0 }
  0xbb   : > { %v404_v42 = vpack.c.bf16 %v388_v36, %v388_v36  ;;  %v408_v43 = vpack.c.bf16 %v392_v37, %v392_v37 }
  0xbc   : > { %v397_v44 = vpack.c.bf16 %v381_v40, %v381_v40  ;;  %v401_v45 = vpack.c.bf16 %v385_v41, %v385_v41 }
  0xbd   : > { %421 = vst.msk [vmem:[%s761_s8 + $0x24] sm:$0xf] %vm411_vm0, %v404_v42 }
  0xbe   : > { %425 = vst.msk [vmem:[%s761_s8 + $0x34] sm:$0xf] %vm411_vm0, %v408_v43 }
  0xbf   : > { %414 = vst.msk [vmem:[%s761_s8 + $0x8] sm:$0xf] %vm411_vm0, %v397_v44 }
  0xc0   : > { %418 = vst.msk [vmem:[%s761_s8 + $0x18] sm:$0xf] %vm411_vm0, %v401_v45  ;;  %v364_v46 = vpop.f32.mrf.mxu2  ;;  %v374_v47 = vpop.f32.mrf.mxu3 }
  0xc1   : > { %v389_v48 = vmax.f32 %v364_v46, 0.0  ;;  %v393_v49 = vmax.f32 %v374_v47, 0.0  ;;  %v346_v50 = vpop.f32.mrf.mxu0  ;;  %v356_v51 = vpop.f32.mrf.mxu1 }
  0xc2   : > { %v382_v52 = vmax.f32 %v346_v50, 0.0  ;;  %v386_v53 = vmax.f32 %v356_v51, 0.0 }
  0xc3   : > { %v405_v54 = vpack.c.bf16 %v389_v48, %v389_v48  ;;  %v409_v55 = vpack.c.bf16 %v393_v49, %v393_v49 }
  0xc4   : > { %v398_v56 = vpack.c.bf16 %v382_v52, %v382_v52  ;;  %v402_v57 = vpack.c.bf16 %v386_v53, %v386_v53 }
  0xc5   : > { %422 = vst.msk [vmem:[%s761_s8 + $0x28] sm:$0xf] %vm411_vm0, %v405_v54 }
  0xc6   : > { %426 = vst.msk [vmem:[%s761_s8 + $0x38] sm:$0xf] %vm411_vm0, %v409_v55 }
  0xc7   : > { %415 = vst.msk [vmem:[%s761_s8 + $0xc] sm:$0xf] %vm411_vm0, %v398_v56 }
  0xc8   : > { %419 = vst.msk [vmem:[%s761_s8 + $0x1c] sm:$0xf] %vm411_vm0, %v402_v57  ;;  %v366_v58 = vpop.f32.mrf.mxu2  ;;  %v376_v59 = vpop.f32.mrf.mxu3 }
  0xc9   : > { %v390_v60 = vmax.f32 %v366_v58, 0.0  ;;  %v394_v61 = vmax.f32 %v376_v59, 0.0 }
  0xcb   : > { %v406_v62 = vpack.c.bf16 %v390_v60, %v390_v60  ;;  %v410_v63 = vpack.c.bf16 %v394_v61, %v394_v61 }
  0xcd   : > { %423 = vst.msk [vmem:[%s761_s8 + $0x2c] sm:$0xf] %vm411_vm0, %v406_v62 }
  0xce   : > { %427 = vst.msk [vmem:[%s761_s8 + $0x3c] sm:$0xf] %vm411_vm0, %v410_v63 }
  0xcf PF: > { %s12_s11 = sadd.s32 1, %s686_s11   ;;  %s807_s9 = smov %s682_s10 }
  0xd0   : > { %p9_p5 = scmp.ge.s32.totalorder %s12_s11, 4   ;;  %s808_s10 = smov %s810_s12 }
  0xd2   :  { %11 = sbr.rel (!%p9_p5) target bundleno = 2 (0x2), region = 61 }

// kernel: h2gcn_forward.11
= control target key start
LH: loop header
LB: loop body
LE: loop exit
PB: predicated region body
PF: predicated region fallthrough
CT: control target
= control target key end

     0   :  { %s1420_s21 = smov 0   ;;  %s1721_s0 = inlined_call_operand.vmem [shape: bf16[256,32], index: 0, kind: input, shape index: {}]   ;;  %s1722_s1 = inlined_call_operand.vmem [shape: bf16[256,64], index: 1, kind: input, shape index: {}]   ;;  %s1723_s2 = inlined_call_operand.vmem [shape: bf16[256,128], index: 2, kind: input, shape index: {}]   ;;  %s1724_s3 = inlined_call_operand.vmem [shape: bf16[32,128], index: 3, kind: input, shape index: {}]   ;;  %s1725_s4 = inlined_call_operand.vmem [shape: bf16[64,128], index: 4, kind: input, shape index: {}]   ;;  %s1726_s5 = inlined_call_operand.vmem [shape: bf16[128,128], index: 5, kind: input, shape index: {}]   ;;  %s1727_s6 = inlined_call_operand.vmem [shape: f32[256,128], index: 6, kind: output, shape index: {}]  }
   0x1 LB: > { %s1076_s22 = sadd.s32 4294967295, %s1383_s21   ;;  %p1080_p0 = scmp.ge.s32.totalorder %s1383_s21, 1  ;;  %s1383_s21 = sphi %s1420_s21, %s16_s21  }
   0x2   : > { %p235_p1 = scmp.lt.s32.totalorder %s1383_s21, 3 }
   0x4   : > { %p236_p2 = pnand %p1080_p0, %p235_p1 }
   0x5   : > { %s1081_s29 = sshll.u32 (!%p236_p2), %s1076_s22, 4 }
   0x6   : > { %239 = sbr.rel (%p236_p2) target bundleno = 533 (0x215), region = 44  ;;  %p276_p3 = scmp.lt.s32.totalorder (!%p236_p2), %s1081_s29, 31 }
   0xb   : > { %v1280_v0 = vld [vmem:[%s1725_s4 + $0x18] sm:$0xff]  ;;  %v1268_v1 = vld [vmem:[%s1724_s3 + $0x8] sm:$0xff]  ;;  %v1279_v3 = vld [vmem:[%s1725_s4 + $0x10] sm:$0xff]  ;;  %s1729_s29 = smov (!%p276_p3, %s1081_s29), 31  ;;  %vm534_vm0 = vcmask 261120   ;;  %vm408_vm1 = vcmask 523264   ;;  %v801_v43 = vlaneseq }
   0xc   : > { %v1296_v2 = vld [vmem:[%s1726_s5 + $0x38] sm:$0xff]  ;;  %437 = vmatpush.bf16.msra.mxu0 %v1280_v0  ;;  %565 = vmatpush.bf16.msra.mxu1 %v1268_v1  ;;  %v1267_v4 = vld [vmem:[%s1724_s3] sm:$0xff]  ;;  %v1295_v5 = vld [vmem:[%s1726_s5 + $0x30] sm:$0xff]  ;;  %s1449_s12 = sshll.u32 %s1729_s29, 2 }
   0xd   : > { %736 = vmatpush.bf16.msra.mxu2 %v1296_v2  ;;  %1297 = vmatpush.bf16.msra.mxu3 %v1296_v2  ;;  %s1455_s15 = scalar_lea.vmem %s1721_s0, %s1449_s12  ;;  %v1278_v6 = vld [vmem:[%s1725_s4 + $0x8] sm:$0xff]  ;;  %v1277_v9 = vld [vmem:[%s1725_s4] sm:$0xff]  ;;  %s1472_s25 = scalar_lea.vmem %s1722_s1, %s1449_s12  ;;  %v1292_v12 = vld [vmem:[%s1726_s5 + $0x18] sm:$0xff]  ;;  %v1533_v46 = vand.u32 127, %v801_v43 }
   0xe   : > { %v1259_v7 = vld [vmem:[%s1455_s15] sm:$0xff]  ;;  %v1294_v8 = vld [vmem:[%s1726_s5 + $0x28] sm:$0xff]  ;;  %v1291_v13 = vld [vmem:[%s1726_s5 + $0x10] sm:$0xff]  ;;  %s1497_s17 = scalar_lea.vmem %s1723_s2, %s1449_s12  ;;  %s1088_s12 = sshll.u32 %s1729_s29, 3 }
   0xf   : > { %v1293_v10 = vld [vmem:[%s1726_s5 + $0x20] sm:$0xff]  ;;  %v1260_v14 = vld [vmem:[%s1455_s15 + $0x8] sm:$0xff]  ;;  %v1261_v19 = vld [vmem:[%s1455_s15 + $0x10] sm:$0xff]  ;;  %vm803_vm2 = vcmp.lt.s32.totalorder %v1533_v46, 8  ;;  %s1684_s19 = scalar_lea.vmem %s1727_s6, %s1088_s12 }
  0x10   : > { %438 = vmatpush.bf16.msra.mxu0 %v1279_v3  ;;  %566 = vmatpush.bf16.msra.mxu1 %v1267_v4  ;;  %v1269_v11 = vld [vmem:[%s1472_s25] sm:$0xff]  ;;  %v1290_v15 = vld [vmem:[%s1726_s5 + $0x8] sm:$0xff]  ;;  %v1271_v20 = vld [vmem:[%s1472_s25 + $0x10] sm:$0xff] }
  0x11   : > { %737 = vmatpush.bf16.msra.mxu2 %v1295_v5  ;;  %1298 = vmatpush.bf16.msra.mxu3 %v1295_v5  ;;  %v1289_v16 = vld [vmem:[%s1726_s5] sm:$0xff]  ;;  %v1270_v17 = vld [vmem:[%s1472_s25 + $0x8] sm:$0xff]  ;;  %v1262_v22 = vld [vmem:[%s1455_s15 + $0x18] sm:$0xff] }
  0x12   : > { %v1281_v18 = vld [vmem:[%s1497_s17] sm:$0xff]  ;;  %v1282_v21 = vld [vmem:[%s1497_s17 + $0x8] sm:$0xff]  ;;  %v1272_v23 = vld [vmem:[%s1472_s25 + $0x18] sm:$0xff] }
  0x13   : > { %1185 = vmatmul.msk.bf16.vlgmr.msra.gmra.mxu1 %vm534_vm0, %v1259_v7  ;;  %v1283_v24 = vld [vmem:[%s1497_s17 + $0x10] sm:$0xff]  ;;  %v1263_v26 = vld [vmem:[%s1455_s15 + $0x20] sm:$0xff]  ;;  %v1284_v28 = vld [vmem:[%s1497_s17 + $0x18] sm:$0xff] }
  0x14   : > { %439 = vmatpush.bf16.msra.mxu0 %v1278_v6  ;;  %v1287_v25 = vld [vmem:[%s1497_s17 + $0x30] sm:$0xff]  ;;  %v1273_v27 = vld [vmem:[%s1472_s25 + $0x20] sm:$0xff]  ;;  %v1288_v29 = vld [vmem:[%s1497_s17 + $0x38] sm:$0xff] }
  0x15   : > { %738 = vmatpush.bf16.msra.mxu2 %v1294_v8  ;;  %1299 = vmatpush.bf16.msra.mxu3 %v1294_v8  ;;  %v1264_v30 = vld [vmem:[%s1455_s15 + $0x28] sm:$0xff]  ;;  %v1285_v32 = vld [vmem:[%s1497_s17 + $0x20] sm:$0xff]  ;;  %v1265_v33 = vld [vmem:[%s1455_s15 + $0x30] sm:$0xff] }
  0x16   : > { %v1274_v31 = vld [vmem:[%s1472_s25 + $0x28] sm:$0xff]  ;;  %v1275_v34 = vld [vmem:[%s1472_s25 + $0x30] sm:$0xff]  ;;  %v1266_v36 = vld [vmem:[%s1455_s15 + $0x38] sm:$0xff] }
  0x17   : > { %v1286_v35 = vld [vmem:[%s1497_s17 + $0x28] sm:$0xff]  ;;  %v1276_v37 = vld [vmem:[%s1472_s25 + $0x38] sm:$0xff] }
  0x18   : > { %440 = vmatpush.bf16.msra.mxu0 %v1277_v9 }
  0x19   : > { %739 = vmatpush.bf16.msra.mxu2 %v1293_v10  ;;  %1300 = vmatpush.bf16.msra.mxu3 %v1293_v10 }
  0x1b   : > { %1137 = vmatmul.msk.bf16.vlgmr.msra.gmra.mxu0 %vm408_vm1, %v1269_v11 }
  0x1d   : > { %740 = vmatpush.bf16.msra.mxu2 %v1292_v12  ;;  %1301 = vmatpush.bf16.msra.mxu3 %v1292_v12 }
  0x21   : > { %741 = vmatpush.bf16.msra.mxu2 %v1291_v13  ;;  %1302 = vmatpush.bf16.msra.mxu3 %v1291_v13 }
  0x23   : > { %1186 = vmatmul.msk.bf16.gmra.mxu1 %vm534_vm0, %v1260_v14 }
  0x25   : > { %742 = vmatpush.bf16.msra.mxu2 %v1290_v15  ;;  %1303 = vmatpush.bf16.msra.mxu3 %v1290_v15 }
  0x29   : > { %743 = vmatpush.bf16.msra.mxu2 %v1289_v16  ;;  %1304 = vmatpush.bf16.msra.mxu3 %v1289_v16 }
  0x2b   : > { %1138 = vmatmul.msk.bf16.gmra.mxu0 %vm408_vm1, %v1270_v17 }
  0x2c   : > { %744 = vmatmul.bf16.vlgmr.msra.gmra.mxu2 %v1281_v18  ;;  %774 = vmatmul.bf16.vlgmr.msra.gmra.mxu3 %v1287_v25 }
  0x33   : > { %1187 = vmatmul.msk.bf16.gmra.mxu1 %vm534_vm0, %v1261_v19 }
  0x3b   : > { %1139 = vmatmul.msk.bf16.gmra.mxu0 %vm408_vm1, %v1271_v20 }
  0x3c   : > { %749 = vmatmul.bf16.gmra.mxu2 %v1282_v21  ;;  %779 = vmatmul.bf16.gmra.mxu3 %v1288_v29 }
  0x43   : > { %1188 = vmatmul.msk.bf16.gmra.mxu1 %vm534_vm0, %v1262_v22 }
  0x4b   : > { %1140 = vmatmul.msk.bf16.gmra.mxu0 %vm408_vm1, %v1272_v23 }
  0x4c   : > { %754 = vmatmul.bf16.gmra.mxu2 %v1283_v24 }
  0x53   : > { %1189 = vmatmul.msk.bf16.gmra.mxu1 %vm534_vm0, %v1263_v26 }
  0x5b   : > { %1141 = vmatmul.msk.bf16.gmra.mxu0 %vm408_vm1, %v1273_v27 }
  0x5c   : > { %759 = vmatmul.bf16.gmra.mxu2 %v1284_v28 }
  0x63   : > { %1190 = vmatmul.msk.bf16.gmra.mxu1 %vm534_vm0, %v1264_v30 }
  0x6b   : > { %1142 = vmatmul.msk.bf16.gmra.mxu0 %vm408_vm1, %v1274_v31 }
  0x6c   : > { %764 = vmatmul.bf16.gmra.mxu2 %v1285_v32 }
  0x73   : > { %1191 = vmatmul.msk.bf16.gmra.mxu1 %vm534_vm0, %v1265_v33 }
  0x7b   : > { %1143 = vmatmul.msk.bf16.gmra.mxu0 %vm408_vm1, %v1275_v34 }
  0x7c   : > { %769 = vmatmul.bf16.gmra.mxu2 %v1286_v35 }
  0x83   : > { %1192 = vmatmul.msk.bf16.gmra.mxu1 %vm534_vm0, %v1266_v36 }
  0x8b   : > { %1144 = vmatmul.msk.bf16.gmra.mxu0 %vm408_vm1, %v1276_v37 }
  0x90   : > { %v568_v38 = vpop.f32.mrf.mxu1 }
  0x98   : > { %v442_v39 = vpop.f32.mrf.mxu0  ;;  %v570_v40 = vpop.f32.mrf.mxu1 }
  0x99   : > { %v569_v47 = vadd.f32 %v568_v38, %v442_v39 }
  0xa0   : > { %v444_v41 = vpop.f32.mrf.mxu0  ;;  %v573_v42 = vpop.f32.mrf.mxu1 }
  0xa1   : > { %v571_v53 = vadd.f32 %v570_v40, %v444_v41 }
  0xa8   : > { %v447_v44 = vpop.f32.mrf.mxu0  ;;  %v575_v45 = vpop.f32.mrf.mxu1 }
  0xa9   : > { %v574_v59 = vadd.f32 %v573_v42, %v447_v44 }
  0xaf   : > { %v745_v48 = vpop.f32.mrf.mxu2  ;;  %v775_v37 = vpop.f32.mrf.mxu3 }
  0xb0   : > { %v785_v49 = vadd.f32 %v745_v48, %v569_v47  ;;  %v449_v50 = vpop.f32.mrf.mxu0  ;;  %v578_v51 = vpop.f32.mrf.mxu1 }
  0xb1   : > { %v576_v1 = vadd.f32 %v575_v45, %v449_v50 }
  0xb2   : > { %v1538_v52 = vsel %vm803_vm2, %v785_v49, -1e+30 }
  0xb3   : > { %820 = vmax.xlane.f32.xlu0 %v1538_v52 }
  0xb7   : > { %v747_v54 = vpop.f32.mrf.mxu2  ;;  %v777_v47 = vpop.f32.mrf.mxu3 }
  0xb8   : > { %v786_v55 = vadd.f32 %v747_v54, %v571_v53  ;;  %v452_v56 = vpop.f32.mrf.mxu0  ;;  %v580_v57 = vpop.f32.mrf.mxu1 }
  0xb9   : > { %v579_v7 = vadd.f32 %v578_v51, %v452_v56 }
  0xba   : > { %v1543_v58 = vsel %vm803_vm2, %v786_v55, -1e+30 }
  0xbb   : > { %822 = vmax.xlane.f32.xlu0 %v1543_v58 }
  0xbf   : > { %v750_v60 = vpop.f32.mrf.mxu2 }
  0xc0   : > { %v787_v61 = vadd.f32 %v750_v60, %v574_v59  ;;  %v454_v62 = vpop.f32.mrf.mxu0  ;;  %v583_v63 = vpop.f32.mrf.mxu1 }
  0xc1   : > { %v581_v13 = vadd.f32 %v580_v57, %v454_v62 }
  0xc2   : > { %v1548_v0 = vsel %vm803_vm2, %v787_v61, -1e+30  ;;  %v780_v61 = vpop.f32.mrf.mxu3 }
  0xc3   : > { %824 = vmax.xlane.f32.xlu1 %v1548_v0 }
  0xc7   : > { %v752_v2 = vpop.f32.mrf.mxu2 }
  0xc8   : > { %v788_v3 = vadd.f32 %v752_v2, %v576_v1  ;;  %v457_v4 = vpop.f32.mrf.mxu0  ;;  %v585_v5 = vpop.f32.mrf.mxu1 }
  0xc9   : > { %v584_v19 = vadd.f32 %v583_v63, %v457_v4 }
  0xca   : > { %v1553_v6 = vsel %vm803_vm2, %v788_v3, -1e+30 }
  0xcb   : > { %826 = vmax.xlane.f32.xlu1 %v1553_v6 }
  0xcf   : > { %v755_v8 = vpop.f32.mrf.mxu2 }
  0xd0   : > { %v789_v9 = vadd.f32 %v755_v8, %v579_v7  ;;  %v459_v10 = vpop.f32.mrf.mxu0  ;;  %v588_v11 = vpop.f32.mrf.mxu1 }
  0xd1   : > { %v586_v25 = vadd.f32 %v585_v5, %v459_v10 }
  0xd2   : > { %v1558_v12 = vsel %vm803_vm2, %v789_v9, -1e+30  ;;  %v782_v9 = vpop.f32.mrf.mxu3 }
  0xd3   : > { %828 = vmax.xlane.f32.xlu2 %v1558_v12 }
  0xd7   : > { %v757_v14 = vpop.f32.mrf.mxu2 }
  0xd8   : > { %v790_v15 = vadd.f32 %v757_v14, %v581_v13  ;;  %v462_v16 = vpop.f32.mrf.mxu0  ;;  %v590_v17 = vpop.f32.mrf.mxu1 }
  0xd9   : > { %v589_v31 = vadd.f32 %v588_v11, %v462_v16 }
  0xda   : > { %v1563_v18 = vsel %vm803_vm2, %v790_v15, -1e+30 }
  0xdb   : > { %830 = vmax.xlane.f32.xlu2 %v1563_v18 }
  0xdf   : > { %v760_v20 = vpop.f32.mrf.mxu2 }
  0xe0   : > { %v791_v21 = vadd.f32 %v760_v20, %v584_v19  ;;  %v464_v22 = vpop.f32.mrf.mxu0  ;;  %v593_v23 = vpop.f32.mrf.mxu1 }
  0xe1   : > { %v591_v38 = vadd.f32 %v590_v17, %v464_v22 }
  0xe2   : > { %v1568_v24 = vsel %vm803_vm2, %v791_v21, -1e+30 }
  0xe3   : > { %832 = vmax.xlane.f32.xlu0 %v1568_v24 }
  0xe7   : > { %v762_v26 = vpop.f32.mrf.mxu2 }
  0xe8   : > { %v792_v27 = vadd.f32 %v762_v26, %v586_v25  ;;  %v467_v28 = vpop.f32.mrf.mxu0  ;;  %v595_v29 = vpop.f32.mrf.mxu1 }
  0xe9   : > { %v594_v45 = vadd.f32 %v593_v23, %v467_v28 }
  0xea   : > { %v1573_v30 = vsel %vm803_vm2, %v792_v27, -1e+30 }
  0xeb   : > { %834 = vmax.xlane.f32.xlu1 %v1573_v30 }
  0xef   : > { %v765_v32 = vpop.f32.mrf.mxu2 }
  0xf0   : > { %v793_v33 = vadd.f32 %v765_v32, %v589_v31  ;;  %v469_v34 = vpop.f32.mrf.mxu0  ;;  %v598_v35 = vpop.f32.mrf.mxu1 }
  0xf1   : > { %v596_v56 = vadd.f32 %v595_v29, %v469_v34 }
  0xf2   : > { %v1578_v36 = vsel %vm803_vm2, %v793_v33, -1e+30 }
  0xf3   : > { %836 = vmax.xlane.f32.xlu2 %v1578_v36 }
  0xf7   : > { %v767_v39 = vpop.f32.mrf.mxu2 }
  0xf8   : > { %v794_v40 = vadd.f32 %v767_v39, %v591_v38  ;;  %v472_v41 = vpop.f32.mrf.mxu0  ;;  %v600_v44 = vpop.f32.mrf.mxu1 }
  0xf9   : > { %v599_v42 = vadd.f32 %v598_v35, %v472_v41 }
  0xfa   : > { %v1583_v43 = vsel %vm803_vm2, %v794_v40, -1e+30 }
  0xfb   : > { %838 = vmax.xlane.f32.xlu0 %v1583_v43  ;;  %v797_v48 = vadd.f32 %v775_v37, %v599_v42 }
  0xfd   : > { %v1592_v55 = vsel %vm803_vm2, %v797_v48, -1e+30 }
  0xff   : > { %v770_v49 = vpop.f32.mrf.mxu2 }
 0x100   : > { %v795_v50 = vadd.f32 %v770_v49, %v594_v45  ;;  %v474_v51 = vpop.f32.mrf.mxu0  ;;  %v603_v57 = vpop.f32.mrf.mxu1 }
 0x101   : > { %v601_v53 = vadd.f32 %v600_v44, %v474_v51 }
 0x102   : > { %v1588_v54 = vsel %vm803_vm2, %v795_v50, -1e+30 }
 0x103   : > { %840 = vmax.xlane.f32.xlu1 %v1588_v54  ;;  %844 = vmax.xlane.f32.xlu0 %v1592_v55  ;;  %v798_v59 = vadd.f32 %v777_v47, %v601_v53 }
 0x105   : > { %v1602_v3 = vsel %vm803_vm2, %v798_v59, -1e+30 }
 0x107   : > { %v772_v60 = vpop.f32.mrf.mxu2 }
 0x108   : > { %v796_v62 = vadd.f32 %v772_v60, %v596_v56  ;;  %v477_v63 = vpop.f32.mrf.mxu0  ;;  %v605_v5 = vpop.f32.mrf.mxu1 }
 0x109   : > { %v604_v1 = vadd.f32 %v603_v57, %v477_v63 }
 0x10a   : > { %v1598_v2 = vsel %vm803_vm2, %v796_v62, -1e+30 }
 0x10b   : > { %842 = vmax.xlane.f32.xlu2 %v1598_v2  ;;  %846 = vmax.xlane.f32.xlu1 %v1602_v3  ;;  %v799_v4 = vadd.f32 %v780_v61, %v604_v1 }
 0x10d   : > { %v1608_v10 = vsel %vm803_vm2, %v799_v4, -1e+30 }
 0x110   : > { %v479_v7 = vpop.f32.mrf.mxu0 }
 0x111   : > { %v606_v8 = vadd.f32 %v605_v5, %v479_v7 }
 0x113   : > { %848 = vmax.xlane.f32.xlu2 %v1608_v10  ;;  %v800_v11 = vadd.f32 %v782_v9, %v606_v8 }
 0x115   : > { %v1613_v13 = vsel %vm803_vm2, %v800_v11, -1e+30 }
 0x116   : > { %850 = vmax.xlane.f32.xlu0 %v1613_v13 }
 0x126   : > { %v821_v14 = vpop.xlane.xlu0 %820 }
 0x127   : > { %v1617_v15 = vsub.f32 %v1538_v52, %v821_v14 }
 0x129   : > { %v868_v16 = vmul.f32 1.442695, %v1617_v15 }
 0x12b   : > { %1313 = vpow2.f32 %v868_v16 }
 0x12e   : > { %v823_v17 = vpop.xlane.xlu0 %822 }
 0x12f   : > { %v1621_v19 = vsub.f32 %v1543_v58, %v823_v17 }
 0x131   : > { %v1314_v20 = vpop.eup %1313  ;;  %v870_v21 = vmul.f32 1.442695, %v1621_v19 }
 0x132   : > { %900 = vadd.xlane.f32.xlu1 %v1314_v20 }
 0x133   : > { %1315 = vpow2.f32 %v870_v21 }
 0x136   : > { %v825_v46 = vpop.xlane.xlu1 %824 }
 0x137   : > { %v1625_v22 = vsub.f32 %v1548_v0, %v825_v46 }
 0x139   : > { %v1316_v23 = vpop.eup %1315  ;;  %v872_v52 = vmul.f32 1.442695, %v1625_v22 }
 0x13a   : > { %902 = vadd.xlane.f32.xlu2 %v1316_v23 }
 0x13b   : > { %1317 = vpow2.f32 %v872_v52 }
 0x13e   : > { %v827_v25 = vpop.xlane.xlu1 %826 }
 0x13f   : > { %v1629_v26 = vsub.f32 %v1553_v6, %v827_v25 }
 0x141   : > { %v1318_v58 = vpop.eup %1317  ;;  %v874_v27 = vmul.f32 1.442695, %v1629_v26 }
 0x142   : > { %904 = vadd.xlane.f32.xlu0 %v1318_v58 }
 0x143   : > { %1319 = vpow2.f32 %v874_v27 }
 0x146   : > { %v829_v28 = vpop.xlane.xlu2 %828 }
 0x147   : > { %v1633_v29 = vsub.f32 %v1558_v12, %v829_v28 }
 0x149   : > { %v1320_v0 = vpop.eup %1319  ;;  %v876_v31 = vmul.f32 1.442695, %v1633_v29 }
 0x14a   : > { %906 = vadd.xlane.f32.xlu1 %v1320_v0 }
 0x14b   : > { %1321 = vpow2.f32 %v876_v31 }
 0x14e   : > { %v831_v32 = vpop.xlane.xlu2 %830 }
 0x14f   : > { %v1637_v33 = vsub.f32 %v1563_v18, %v831_v32 }
 0x151   : > { %v1322_v6 = vpop.eup %1321  ;;  %v878_v34 = vmul.f32 1.442695, %v1637_v33 }
 0x152   : > { %908 = vadd.xlane.f32.xlu2 %v1322_v6 }
 0x153   : > { %1323 = vpow2.f32 %v878_v34 }
 0x156   : > { %v833_v35 = vpop.xlane.xlu0 %832 }
 0x157   : > { %v1641_v37 = vsub.f32 %v1568_v24, %v833_v35 }
 0x159   : > { %v1324_v12 = vpop.eup %1323  ;;  %v880_v38 = vmul.f32 1.442695, %v1641_v37 }
 0x15a   : > { %910 = vadd.xlane.f32.xlu0 %v1324_v12 }
 0x15b   : > { %1325 = vpow2.f32 %v880_v38 }
 0x15e   : > { %v835_v39 = vpop.xlane.xlu1 %834 }
 0x15f   : > { %v1645_v40 = vsub.f32 %v1573_v30, %v835_v39 }
 0x161   : > { %v1326_v18 = vpop.eup %1325  ;;  %v882_v41 = vmul.f32 1.442695, %v1645_v40 }
 0x162   : > { %912 = vadd.xlane.f32.xlu1 %v1326_v18 }
 0x163   : > { %1327 = vpow2.f32 %v882_v41 }
 0x166   : > { %v837_v42 = vpop.xlane.xlu2 %836 }
 0x167   : > { %v1649_v44 = vsub.f32 %v1578_v36, %v837_v42 }
 0x169   : > { %v1328_v24 = vpop.eup %1327  ;;  %v884_v45 = vmul.f32 1.442695, %v1649_v44 }
 0x16a   : > { %914 = vadd.xlane.f32.xlu2 %v1328_v24 }
 0x16b   : > { %1329 = vpow2.f32 %v884_v45 }
 0x16e   : > { %v839_v47 = vpop.xlane.xlu0 %838 }
 0x16f   : > { %v1653_v48 = vsub.f32 %v1583_v43, %v839_v47 }
 0x171   : > { %v1330_v30 = vpop.eup %1329  ;;  %v886_v49 = vmul.f32 1.442695, %v1653_v48 }
 0x172   : > { %916 = vadd.xlane.f32.xlu0 %v1330_v30 }
 0x173   : > { %1331 = vpow2.f32 %v886_v49 }
 0x176   : > { %v841_v50 = vpop.xlane.xlu1 %840  ;;  %v845_v51 = vpop.xlane.xlu0 %844 }
 0x177   : > { %v1657_v53 = vsub.f32 %v1588_v54, %v841_v50  ;;  %v1660_v36 = vsub.f32 %v1592_v55, %v845_v51 }
 0x179   : > { %v1332_v56 = vpop.eup %1331  ;;  %v888_v57 = vmul.f32 1.442695, %v1657_v53  ;;  %v892_v59 = vmul.f32 1.442695, %v1660_v36 }
 0x17a   : > { %918 = vadd.xlane.f32.xlu1 %v1332_v56 }
 0x17b   : > { %1333 = vpow2.f32 %v888_v57 }
 0x17c   : > { %1335 = vpow2.f32 %v892_v59 }
 0x17e   : > { %v843_v43 = vpop.xlane.xlu2 %842  ;;  %v847_v60 = vpop.xlane.xlu1 %846 }
 0x17f   : > { %v1665_v61 = vsub.f32 %v1598_v2, %v843_v43  ;;  %v1668_v62 = vsub.f32 %v1602_v3, %v847_v60 }
 0x181   : > { %v1334_v54 = vpop.eup %1333  ;;  %v890_v55 = vmul.f32 1.442695, %v1665_v61  ;;  %v894_v63 = vmul.f32 1.442695, %v1668_v62 }
 0x182   : > { %v1336_v1 = vpop.eup %1335  ;;  %920 = vadd.xlane.f32.xlu2 %v1334_v54 }
 0x183   : > { %1337 = vpow2.f32 %v890_v55  ;;  %924 = vadd.xlane.f32.xlu1 %v1336_v1 }
 0x184   : > { %1339 = vpow2.f32 %v894_v63 }
 0x186   : > { %v849_v4 = vpop.xlane.xlu2 %848 }
 0x187   : > { %v1673_v5 = vsub.f32 %v1608_v10, %v849_v4 }
 0x189   : > { %v1338_v7 = vpop.eup %1337  ;;  %v896_v2 = vmul.f32 1.442695, %v1673_v5  ;;  %v851_v3 = vpop.xlane.xlu0 %850 }
 0x18a   : > { %v1340_v8 = vpop.eup %1339  ;;  %922 = vadd.xlane.f32.xlu0 %v1338_v7  ;;  %v1677_v9 = vsub.f32 %v1613_v13, %v851_v3 }
 0x18b   : > { %1341 = vpow2.f32 %v896_v2  ;;  %926 = vadd.xlane.f32.xlu2 %v1340_v8 }
 0x18c   : > { %v898_v11 = vmul.f32 1.442695, %v1677_v9 }
 0x18e   : > { %1343 = vpow2.f32 %v898_v11 }
 0x191   : > { %v1342_v14 = vpop.eup %1341 }
 0x192   : > { %928 = vadd.xlane.f32.xlu0 %v1342_v14 }
 0x194   : > { %v1344_v16 = vpop.eup %1343 }
 0x195   : > { %930 = vadd.xlane.f32.xlu1 %v1344_v16 }
 0x1a5   : > { %v901_v10 = vpop.xlane.xlu1 %900 }
 0x1a6   : > { %1345 = vlog2.f32 %v901_v10 }
 0x1ac   : > { %v1346_v17 = vpop.eup %1345 }
 0x1ad   : > { %v933_v20 = vmul.f32 0.6931472, %v1346_v17  ;;  %v903_v21 = vpop.xlane.xlu2 %902 }
 0x1ae   : > { %1347 = vlog2.f32 %v903_v21 }
 0x1af   : > { %v964_v13 = vsub.f32 %v1617_v15, %v933_v20 }
 0x1b1   : > { %980 = vst [vmem:[%s1684_s19] sm:$0xff] %v964_v13 }
 0x1b4   : > { %v1348_v46 = vpop.eup %1347 }
 0x1b5   : > { %v935_v23 = vmul.f32 0.6931472, %v1348_v46  ;;  %v905_v52 = vpop.xlane.xlu0 %904 }
 0x1b6   : > { %1349 = vlog2.f32 %v905_v52 }
 0x1b7   : > { %v965_v25 = vsub.f32 %v1621_v19, %v935_v23 }
 0x1b9   : > { %981 = vst [vmem:[%s1684_s19 + $0x8] sm:$0xff] %v965_v25 }
 0x1bc   : > { %v1350_v58 = vpop.eup %1349 }
 0x1bd   : > { %v937_v27 = vmul.f32 0.6931472, %v1350_v58  ;;  %v907_v28 = vpop.xlane.xlu1 %906 }
 0x1be   : > { %1351 = vlog2.f32 %v907_v28 }
 0x1bf   : > { %v966_v0 = vsub.f32 %v1625_v22, %v937_v27 }
 0x1c1   : > { %982 = vst [vmem:[%s1684_s19 + $0x10] sm:$0xff] %v966_v0 }
 0x1c4   : > { %v1352_v31 = vpop.eup %1351 }
 0x1c5   : > { %v939_v32 = vmul.f32 0.6931472, %v1352_v31  ;;  %v909_v15 = vpop.xlane.xlu2 %908 }
 0x1c6   : > { %1353 = vlog2.f32 %v909_v15 }
 0x1c7   : > { %v967_v6 = vsub.f32 %v1629_v26, %v939_v32 }
 0x1c9   : > { %983 = vst [vmem:[%s1684_s19 + $0x18] sm:$0xff] %v967_v6 }
 0x1cc   : > { %v1354_v34 = vpop.eup %1353 }
 0x1cd   : > { %v941_v35 = vmul.f32 0.6931472, %v1354_v34  ;;  %v911_v19 = vpop.xlane.xlu0 %910 }
 0x1ce   : > { %1355 = vlog2.f32 %v911_v19 }
 0x1cf   : > { %v968_v12 = vsub.f32 %v1633_v29, %v941_v35 }
 0x1d1   : > { %984 = vst [vmem:[%s1684_s19 + $0x20] sm:$0xff] %v968_v12 }
 0x1d4   : > { %v1356_v38 = vpop.eup %1355 }
 0x1d5   : > { %v943_v39 = vmul.f32 0.6931472, %v1356_v38  ;;  %v913_v22 = vpop.xlane.xlu1 %912 }
 0x1d6   : > { %1357 = vlog2.f32 %v913_v22 }
 0x1d7   : > { %v969_v18 = vsub.f32 %v1637_v33, %v943_v39 }
 0x1d9   : > { %985 = vst [vmem:[%s1684_s19 + $0x28] sm:$0xff] %v969_v18 }
 0x1dc   : > { %v1358_v41 = vpop.eup %1357 }
 0x1dd   : > { %v945_v42 = vmul.f32 0.6931472, %v1358_v41  ;;  %v915_v26 = vpop.xlane.xlu2 %914 }
 0x1de   : > { %1359 = vlog2.f32 %v915_v26 }
 0x1df   : > { %v970_v24 = vsub.f32 %v1641_v37, %v945_v42 }
 0x1e1   : > { %986 = vst [vmem:[%s1684_s19 + $0x30] sm:$0xff] %v970_v24 }
 0x1e4   : > { %v1360_v45 = vpop.eup %1359 }
 0x1e5   : > { %v947_v47 = vmul.f32 0.6931472, %v1360_v45  ;;  %v917_v29 = vpop.xlane.xlu0 %916 }
 0x1e6   : > { %1361 = vlog2.f32 %v917_v29 }
 0x1e7   : > { %v971_v30 = vsub.f32 %v1645_v40, %v947_v47 }
 0x1e9   : > { %987 = vst [vmem:[%s1684_s19 + $0x38] sm:$0xff] %v971_v30 }
 0x1ec   : > { %v1362_v49 = vpop.eup %1361 }
 0x1ed   : > { %v949_v50 = vmul.f32 0.6931472, %v1362_v49  ;;  %v919_v33 = vpop.xlane.xlu1 %918 }
 0x1ee   : > { %1363 = vlog2.f32 %v919_v33 }
 0x1ef   : > { %v972_v51 = vsub.f32 %v1649_v44, %v949_v50 }
 0x1f1   : > { %988 = vst [vmem:[%s1684_s19 + $0x40] sm:$0xff] %v972_v51 }
 0x1f4   : > { %v1364_v56 = vpop.eup %1363 }
 0x1f5   : > { %v951_v57 = vmul.f32 0.6931472, %v1364_v56  ;;  %v921_v59 = vpop.xlane.xlu2 %920 }
 0x1f6   : > { %1365 = vlog2.f32 %v921_v59  ;;  %v925_v37 = vpop.xlane.xlu1 %924 }
 0x1f7   : > { %v973_v43 = vsub.f32 %v1653_v48, %v951_v57  ;;  %1367 = vlog2.f32 %v925_v37 }
 0x1f9   : > { %989 = vst [vmem:[%s1684_s19 + $0x48] sm:$0xff] %v973_v43 }
 0x1fc   : > { %v1366_v40 = vpop.eup %1365 }
 0x1fd   : > { %v1368_v60 = vpop.eup %1367  ;;  %v953_v54 = vmul.f32 0.6931472, %v1366_v40  ;;  %v923_v55 = vpop.xlane.xlu0 %922 }
 0x1fe   : > { %v957_v63 = vmul.f32 0.6931472, %v1368_v60  ;;  %v927_v1 = vpop.xlane.xlu2 %926  ;;  %1369 = vlog2.f32 %v923_v55 }
 0x1ff   : > { %v974_v44 = vsub.f32 %v1657_v53, %v953_v54  ;;  %1371 = vlog2.f32 %v927_v1 }
 0x200   : > { %v976_v4 = vsub.f32 %v1660_v36, %v957_v63 }
 0x201   : > { %990 = vst [vmem:[%s1684_s19 + $0x50] sm:$0xff] %v974_v44 }
 0x202   : > { %992 = vst [vmem:[%s1684_s19 + $0x60] sm:$0xff] %v976_v4 }
 0x204   : > { %v1370_v7 = vpop.eup %1369 }
 0x205   : > { %v1372_v48 = vpop.eup %1371  ;;  %v955_v2 = vmul.f32 0.6931472, %v1370_v7  ;;  %v929_v3 = vpop.xlane.xlu0 %928 }
 0x206   : > { %v959_v8 = vmul.f32 0.6931472, %v1372_v48  ;;  %1373 = vlog2.f32 %v929_v3 }
 0x207   : > { %v975_v11 = vsub.f32 %v1665_v61, %v955_v2 }
 0x208   : > { %v977_v14 = vsub.f32 %v1668_v62, %v959_v8  ;;  %v931_v16 = vpop.xlane.xlu1 %930 }
 0x209   : > { %991 = vst [vmem:[%s1684_s19 + $0x58] sm:$0xff] %v975_v11  ;;  %1375 = vlog2.f32 %v931_v16 }
 0x20a   : > { %993 = vst [vmem:[%s1684_s19 + $0x68] sm:$0xff] %v977_v14 }
 0x20c   : > { %v1374_v53 = vpop.eup %1373 }
 0x20d   : > { %v961_v36 = vmul.f32 0.6931472, %v1374_v53 }
 0x20f   : > { %v1376_v10 = vpop.eup %1375  ;;  %v978_v17 = vsub.f32 %v1673_v5, %v961_v36 }
 0x210   : > { %v963_v20 = vmul.f32 0.6931472, %v1376_v10 }
 0x211   : > { %994 = vst [vmem:[%s1684_s19 + $0x70] sm:$0xff] %v978_v17 }
 0x212   : > { %v979_v21 = vsub.f32 %v1677_v9, %v963_v20 }
 0x214   : > { %995 = vst [vmem:[%s1684_s19 + $0x78] sm:$0xff] %v979_v21 }
 0x215 PF: > { %s16_s21 = sadd.s32 1, %s1383_s21  }
 0x216   : > { %p13_p4 = scmp.ge.s32.totalorder %s16_s21, 4  }
 0x218   :  { %15 = sbr.rel (!%p13_p4) target bundleno = 1 (0x1), region = 80 }

</bundles_post_ra>
